<compile_context>
chip_gen: v7x
topology: tpu7x:2x2x1
jax: 0.10.0
libtpu: 0.0.40
codegen_flags: <defaults>
</compile_context>

<pallas_src>
import jax
import jax.numpy as jnp
from jax.experimental import pallas as pl
from jax.experimental.pallas import tpu as pltpu


# Logical (PyTorch) dimensions.
D_IN, H1, H2, H3, D_OUT = 2950, 96, 192, 384, 1
# Lane-aligned (padded) output dims per layer; D_IN is NOT padded.
H1_PAD, H2_PAD, H3_PAD, OUT_PAD = 128, 256, 384, 128

_MAX_TB = 512  # batch tile; ~20 MB peak VMEM -> safe on v5e/v6e/v7x


def _round_up(n, m):
    return ((n + m - 1) // m) * m


def _mlp_kernel(x_ref,
                w1_ref, b1_ref,
                w2_ref, b2_ref,
                w3_ref, b3_ref,
                w4_ref, b4_ref,
                o_ref):
    # fc1 + ReLU  (bf16 operands -> f32 MXU accumulate; ragged K=2950 tail is
    # masked by Mosaic)
    x = x_ref[...].astype(jnp.bfloat16)
    h = jnp.dot(x, w1_ref[...], preferred_element_type=jnp.float32)
    h = jnp.maximum(h + b1_ref[...], 0.0)
    # fc2 + ReLU
    h = jnp.dot(h.astype(jnp.bfloat16), w2_ref[...],
                preferred_element_type=jnp.float32)
    h = jnp.maximum(h + b2_ref[...], 0.0)
    # fc3 + ReLU
    h = jnp.dot(h.astype(jnp.bfloat16), w3_ref[...],
                preferred_element_type=jnp.float32)
    h = jnp.maximum(h + b3_ref[...], 0.0)
    # out + Sigmoid  (out dim padded to 128 -> lane-dense, unmasked stores;
    # padded columns give sigmoid(0)=0.5 and are sliced away in the wrapper)
    z = jnp.dot(h.astype(jnp.bfloat16), w4_ref[...],
                preferred_element_type=jnp.float32) + b4_ref[...]
    # exp on EUP; approximate reciprocal also on EUP -> epilogue off the VALU.
    o_ref[...] = pl.reciprocal(1.0 + jnp.exp(-z), approx=True)


def mlp_forward(x, prepared_params):
    """x: [B, 2950] float32 -> y: [B, 1] float32."""
    B = x.shape[0]
    # Pad batch only to a sublane multiple (8) — no pad along features.
    B_pad = _round_up(max(B, 1), 8)
    if B_pad != B:
        x = jnp.pad(x, ((0, B_pad - B), (0, 0)))

    # Batch tile: <= _MAX_TB, >= 8, and >= 2 grid steps when the batch allows
    # it so both v7x TensorCores get work.
    TB = max(8, min(_MAX_TB, _round_up(pl.cdiv(B_pad, 2), 8)))
    grid = (pl.cdiv(B_pad, TB),)  # ragged last block OK: OOB rows discarded

    def resident_spec(a):
        # Same block every grid step -> VMEM-resident, DMA'd from HBM once.
        return pl.BlockSpec(a.shape, lambda i: (0, 0))

    out = pl.pallas_call(
        _mlp_kernel,
        out_shape=jax.ShapeDtypeStruct((B_pad, OUT_PAD), jnp.float32),
        grid=grid,
        in_specs=[pl.BlockSpec((TB, D_IN), lambda i: (i, 0))]
                 + [resident_spec(a) for a in prepared_params],
        out_specs=pl.BlockSpec((TB, OUT_PAD), lambda i: (i, 0)),
        compiler_params=pltpu.CompilerParams(
            dimension_semantics=("parallel",),
            vmem_limit_bytes=32 * 1024 * 1024,
        ),
    )(x, *prepared_params)

    return out[:B, :1]


def init_params(key):
    """f32 params, [in, out] layout, mimicking nn.Linear's uniform init."""
    params = []
    dims = [(D_IN, H1), (H1, H2), (H2, H3), (H3, D_OUT)]
    for (fan_in, fan_out) in dims:
        key, kw, kb = jax.random.split(key, 3)
        bound = 1.0 / jnp.sqrt(jnp.float32(fan_in))
        w = jax.random.uniform(kw, (fan_in, fan_out), jnp.float32, -bound, bound)
        b = jax.random.uniform(kb, (1, fan_out), jnp.float32, -bound, bound)
        params += [w, b]
    return params


def prepare_params(params):
    """Pad output dims to lane multiples; weights -> bf16, biases stay f32.

    W1 keeps its 2950 rows (feature dim is not padded). All pad entries are
    exactly zero (required: padded hidden columns must stay 0 through ReLU,
    and padded output columns rely on b4's pad being 0).
    """
    w1, b1, w2, b2, w3, b3, w4, b4 = params

    def pad_w(w, rows, cols):
        out = jnp.zeros((rows, cols), jnp.bfloat16)
        return out.at[:w.shape[0], :w.shape[1]].set(w.astype(jnp.bfloat16))

    def pad_b(b, cols):
        out = jnp.zeros((1, cols), jnp.float32)
        return out.at[:, :b.shape[1]].set(b)

    return (
        pad_w(w1, D_IN, H1_PAD),   pad_b(b1, H1_PAD),   # rows stay 2950
        pad_w(w2, H1_PAD, H2_PAD), pad_b(b2, H2_PAD),
        pad_w(w3, H2_PAD, H3_PAD), pad_b(b3, H3_PAD),
        pad_w(w4, H3_PAD, OUT_PAD), pad_b(b4, OUT_PAD),
    )


def _reference_f32(x, params):
    w1, b1, w2, b2, w3, b3, w4, b4 = params
    h = jnp.maximum(x @ w1 + b1, 0.0)
    h = jnp.maximum(h @ w2 + b2, 0.0)
    h = jnp.maximum(h @ w3 + b3, 0.0)
    z = h @ w4 + b4
    return 1.0 / (1.0 + jnp.exp(-z))


def _reference_bf16(x, params):
    """Same bf16-operand / f32-accumulate math the kernel performs."""
    w1, b1, w2, b2, w3, b3, w4, b4 = params
    bf = jnp.bfloat16
    h = jnp.dot(x.astype(bf), w1.astype(bf), preferred_element_type=jnp.float32)
    h = jnp.maximum(h + b1, 0.0)
    h = jnp.dot(h.astype(bf), w2.astype(bf), preferred_element_type=jnp.float32)
    h = jnp.maximum(h + b2, 0.0)
    h = jnp.dot(h.astype(bf), w3.astype(bf), preferred_element_type=jnp.float32)
    h = jnp.maximum(h + b3, 0.0)
    z = jnp.dot(h.astype(bf), w4.astype(bf), preferred_element_type=jnp.float32) + b4
    return 1.0 / (1.0 + jnp.exp(-z))


if __name__ == "__main__":
    key = jax.random.PRNGKey(0)
    kx, kp = jax.random.split(key)

    params = init_params(kp)
    prepared = prepare_params(params)

    # Small deterministic example (B=8).
    B = 8
    x = jax.random.normal(kx, (B, D_IN), jnp.float32)
    y = jax.block_until_ready(mlp_forward(x, prepared))
    assert y.shape == (B, D_OUT)

    # Tight check vs a plain-JAX model doing identical bf16 casts
    # (tolerance covers the approx-EUP reciprocal in the sigmoid).
    y_bf16 = _reference_bf16(x, params)
    assert jnp.allclose(y, y_bf16, atol=4e-3, rtol=0), "mismatch vs bf16 reference"
    # Sanity check vs the full-precision reference.
    y_f32 = _reference_f32(x, params)
    assert jnp.allclose(y, y_f32, atol=2e-2, rtol=0), "mismatch vs f32 reference"

    # Second check: batch that exercises the cdiv grid with a ragged last
    # block (B=40 -> TB=24, grid=2, OOB rows masked/discarded).
    B2 = 40
    x2 = jax.random.normal(jax.random.PRNGKey(1), (B2, D_IN), jnp.float32)
    y2 = jax.block_until_ready(mlp_forward(x2, prepared))
    assert y2.shape == (B2, D_OUT)
    assert jnp.allclose(y2, _reference_bf16(x2, params), atol=4e-3, rtol=0), \
        "ragged-grid mismatch vs bf16 reference"

    print("KERNEL_OK")
</pallas_src>

<mosaic_0001>
module attributes {stable_mosaic.version = 11 : i64} {
  func.func @_mlp_kernel(%arg0: i32, %arg1: memref<8x2950xf32, #tpu.memory_space<vmem>>, %arg2: memref<2950x128xbf16, #tpu.memory_space<vmem>>, %arg3: memref<1x128xf32, #tpu.memory_space<vmem>>, %arg4: memref<128x256xbf16, #tpu.memory_space<vmem>>, %arg5: memref<1x256xf32, #tpu.memory_space<vmem>>, %arg6: memref<256x384xbf16, #tpu.memory_space<vmem>>, %arg7: memref<1x384xf32, #tpu.memory_space<vmem>>, %arg8: memref<384x128xbf16, #tpu.memory_space<vmem>>, %arg9: memref<1x128xf32, #tpu.memory_space<vmem>>, %arg10: memref<8x128xf32, #tpu.memory_space<vmem>>) attributes {dimension_semantics = [#tpu.dimension_semantics<parallel>], iteration_bounds = array<i64: 1>, scalar_prefetch = 0 : i64, scratch_operands = 0 : i64, tpu.core_type = #tpu.core_type<tc>, window_params = [{transform_indices = @transform_0, window_bounds = array<i64: 8, 2950>}, {pipeline_mode = #tpu.pipeline_mode<synchronous>, transform_indices = @transform_1, window_bounds = array<i64: 2950, 128>}, {pipeline_mode = #tpu.pipeline_mode<synchronous>, transform_indices = @transform_2, window_bounds = array<i64: 1, 128>}, {pipeline_mode = #tpu.pipeline_mode<synchronous>, transform_indices = @transform_3, window_bounds = array<i64: 128, 256>}, {pipeline_mode = #tpu.pipeline_mode<synchronous>, transform_indices = @transform_4, window_bounds = array<i64: 1, 256>}, {pipeline_mode = #tpu.pipeline_mode<synchronous>, transform_indices = @transform_5, window_bounds = array<i64: 256, 384>}, {pipeline_mode = #tpu.pipeline_mode<synchronous>, transform_indices = @transform_6, window_bounds = array<i64: 1, 384>}, {pipeline_mode = #tpu.pipeline_mode<synchronous>, transform_indices = @transform_7, window_bounds = array<i64: 384, 128>}, {pipeline_mode = #tpu.pipeline_mode<synchronous>, transform_indices = @transform_8, window_bounds = array<i64: 1, 128>}, {transform_indices = @transform_9, window_bounds = array<i64: 8, 128>}]} {
    %c0 = arith.constant 0 : index
    %c0_0 = arith.constant 0 : index
    %0 = vector.load %arg1[%c0, %c0_0] : memref<8x2950xf32, #tpu.memory_space<vmem>>, vector<8x2950xf32>
    %1 = arith.truncf %0 : vector<8x2950xf32> to vector<8x2950xbf16>
    %c0_1 = arith.constant 0 : index
    %c0_2 = arith.constant 0 : index
    %2 = vector.load %arg2[%c0_1, %c0_2] : memref<2950x128xbf16, #tpu.memory_space<vmem>>, vector<2950x128xbf16>
    %cst = arith.constant dense<0.000000e+00> : vector<8x128xf32>
    %3 = tpu.matmul %1, %2, %cst {dimension_numbers = #tpu.dot_dimension_numbers<[1], [0], [0], [1], [0, 0, 1, 1], [], []>} : vector<8x2950xbf16>, vector<2950x128xbf16>, vector<8x128xf32> -> vector<8x128xf32>
    %c0_3 = arith.constant 0 : index
    %c0_4 = arith.constant 0 : index
    %4 = vector.load %arg3[%c0_3, %c0_4] : memref<1x128xf32, #tpu.memory_space<vmem>>, vector<1x128xf32>
    %5 = vector.broadcast %4 : vector<1x128xf32> to vector<8x128xf32>
    %6 = arith.addf %3, %5 : vector<8x128xf32>
    %cst_5 = arith.constant 0.000000e+00 : f32
    %7 = vector.broadcast %cst_5 : f32 to vector<8x128xf32>
    %8 = arith.maximumf %6, %7 : vector<8x128xf32>
    %9 = arith.truncf %8 : vector<8x128xf32> to vector<8x128xbf16>
    %c0_6 = arith.constant 0 : index
    %c0_7 = arith.constant 0 : index
    %10 = vector.load %arg4[%c0_6, %c0_7] : memref<128x256xbf16, #tpu.memory_space<vmem>>, vector<128x256xbf16>
    %cst_8 = arith.constant dense<0.000000e+00> : vector<8x256xf32>
    %11 = tpu.matmul %9, %10, %cst_8 {dimension_numbers = #tpu.dot_dimension_numbers<[1], [0], [0], [1], [0, 0, 1, 1], [], []>} : vector<8x128xbf16>, vector<128x256xbf16>, vector<8x256xf32> -> vector<8x256xf32>
    %c0_9 = arith.constant 0 : index
    %c0_10 = arith.constant 0 : index
    %12 = vector.load %arg5[%c0_9, %c0_10] : memref<1x256xf32, #tpu.memory_space<vmem>>, vector<1x256xf32>
    %13 = vector.broadcast %12 : vector<1x256xf32> to vector<8x256xf32>
    %14 = arith.addf %11, %13 : vector<8x256xf32>
    %cst_11 = arith.constant 0.000000e+00 : f32
    %15 = vector.broadcast %cst_11 : f32 to vector<8x256xf32>
    %16 = arith.maximumf %14, %15 : vector<8x256xf32>
    %17 = arith.truncf %16 : vector<8x256xf32> to vector<8x256xbf16>
    %c0_12 = arith.constant 0 : index
    %c0_13 = arith.constant 0 : index
    %18 = vector.load %arg6[%c0_12, %c0_13] : memref<256x384xbf16, #tpu.memory_space<vmem>>, vector<256x384xbf16>
    %cst_14 = arith.constant dense<0.000000e+00> : vector<8x384xf32>
    %19 = tpu.matmul %17, %18, %cst_14 {dimension_numbers = #tpu.dot_dimension_numbers<[1], [0], [0], [1], [0, 0, 1, 1], [], []>} : vector<8x256xbf16>, vector<256x384xbf16>, vector<8x384xf32> -> vector<8x384xf32>
    %c0_15 = arith.constant 0 : index
    %c0_16 = arith.constant 0 : index
    %20 = vector.load %arg7[%c0_15, %c0_16] : memref<1x384xf32, #tpu.memory_space<vmem>>, vector<1x384xf32>
    %21 = vector.broadcast %20 : vector<1x384xf32> to vector<8x384xf32>
    %22 = arith.addf %19, %21 : vector<8x384xf32>
    %cst_17 = arith.constant 0.000000e+00 : f32
    %23 = vector.broadcast %cst_17 : f32 to vector<8x384xf32>
    %24 = arith.maximumf %22, %23 : vector<8x384xf32>
    %25 = arith.truncf %24 : vector<8x384xf32> to vector<8x384xbf16>
    %c0_18 = arith.constant 0 : index
    %c0_19 = arith.constant 0 : index
    %26 = vector.load %arg8[%c0_18, %c0_19] : memref<384x128xbf16, #tpu.memory_space<vmem>>, vector<384x128xbf16>
    %cst_20 = arith.constant dense<0.000000e+00> : vector<8x128xf32>
    %27 = tpu.matmul %25, %26, %cst_20 {dimension_numbers = #tpu.dot_dimension_numbers<[1], [0], [0], [1], [0, 0, 1, 1], [], []>} : vector<8x384xbf16>, vector<384x128xbf16>, vector<8x128xf32> -> vector<8x128xf32>
    %c0_21 = arith.constant 0 : index
    %c0_22 = arith.constant 0 : index
    %28 = vector.load %arg9[%c0_21, %c0_22] : memref<1x128xf32, #tpu.memory_space<vmem>>, vector<1x128xf32>
    %29 = vector.broadcast %28 : vector<1x128xf32> to vector<8x128xf32>
    %30 = arith.addf %27, %29 : vector<8x128xf32>
    %cst_23 = arith.constant 0.000000e+00 : f32
    %31 = vector.broadcast %cst_23 : f32 to vector<8x128xf32>
    %32 = arith.subf %31, %30 : vector<8x128xf32>
    %33 = math.exp %32 : vector<8x128xf32>
    %cst_24 = arith.constant 1.000000e+00 : f32
    %34 = vector.broadcast %cst_24 : f32 to vector<8x128xf32>
    %35 = arith.addf %34, %33 : vector<8x128xf32>
    %36 = tpu.reciprocal %35 {approx = true} : vector<8x128xf32> -> vector<8x128xf32>
    %c0_25 = arith.constant 0 : index
    %c0_26 = arith.constant 0 : index
    %37 = vector.load %arg10[%c0_25, %c0_26] : memref<8x128xf32, #tpu.memory_space<vmem>>, vector<8x128xf32>
    tpu.vector_store %arg10[%c0_25, %c0_26], %36 {strides = array<i32>} : memref<8x128xf32, #tpu.memory_space<vmem>>, vector<8x128xf32>,
    return
  }
  func.func @transform_0(%arg0: i32) -> (i32, i32) {
    %c0_i32 = arith.constant 0 : i32
    %c0_i32_0 = arith.constant 0 : i32
    return %arg0, %c0_i32 : i32, i32
  }
  func.func @transform_1(%arg0: i32) -> (i32, i32) {
    %c0_i32 = arith.constant 0 : i32
    %c0_i32_0 = arith.constant 0 : i32
    %c0_i32_1 = arith.constant 0 : i32
    return %c0_i32, %c0_i32_0 : i32, i32
  }
  func.func @transform_2(%arg0: i32) -> (i32, i32) {
    %c0_i32 = arith.constant 0 : i32
    %c0_i32_0 = arith.constant 0 : i32
    %c0_i32_1 = arith.constant 0 : i32
    return %c0_i32, %c0_i32_0 : i32, i32
  }
  func.func @transform_3(%arg0: i32) -> (i32, i32) {
    %c0_i32 = arith.constant 0 : i32
    %c0_i32_0 = arith.constant 0 : i32
    %c0_i32_1 = arith.constant 0 : i32
    return %c0_i32, %c0_i32_0 : i32, i32
  }
  func.func @transform_4(%arg0: i32) -> (i32, i32) {
    %c0_i32 = arith.constant 0 : i32
    %c0_i32_0 = arith.constant 0 : i32
    %c0_i32_1 = arith.constant 0 : i32
    return %c0_i32, %c0_i32_0 : i32, i32
  }
  func.func @transform_5(%arg0: i32) -> (i32, i32) {
    %c0_i32 = arith.constant 0 : i32
    %c0_i32_0 = arith.constant 0 : i32
    %c0_i32_1 = arith.constant 0 : i32
    return %c0_i32, %c0_i32_0 : i32, i32
  }
  func.func @transform_6(%arg0: i32) -> (i32, i32) {
    %c0_i32 = arith.constant 0 : i32
    %c0_i32_0 = arith.constant 0 : i32
    %c0_i32_1 = arith.constant 0 : i32
    return %c0_i32, %c0_i32_0 : i32, i32
  }
  func.func @transform_7(%arg0: i32) -> (i32, i32) {
    %c0_i32 = arith.constant 0 : i32
    %c0_i32_0 = arith.constant 0 : i32
    %c0_i32_1 = arith.constant 0 : i32
    return %c0_i32, %c0_i32_0 : i32, i32
  }
  func.func @transform_8(%arg0: i32) -> (i32, i32) {
    %c0_i32 = arith.constant 0 : i32
    %c0_i32_0 = arith.constant 0 : i32
    %c0_i32_1 = arith.constant 0 : i32
    return %c0_i32, %c0_i32_0 : i32, i32
  }
  func.func @transform_9(%arg0: i32) -> (i32, i32) {
    %c0_i32 = arith.constant 0 : i32
    %c0_i32_0 = arith.constant 0 : i32
    return %arg0, %c0_i32 : i32, i32
  }
}

</mosaic_0001>

<bundles_post_ra>
// kernel: tpu_custom_call.1
= control target key start
LH: loop header
LB: loop body
LE: loop exit
PB: predicated region body
PF: predicated region fallthrough
CT: control target
= control target key end

     0   :  { %14 = vsyncpa [#allocation3], 0  ;;  %s4241_s0 = inlined_call_operand.hbm [shape: f32[8,2950], index: 0, kind: input, shape index: {}]   ;;  %s4242_s1 = inlined_call_operand.hbm [shape: bf16[2950,128], index: 1, kind: input, shape index: {}]   ;;  %s4243_s2 = inlined_call_operand.vmem [shape: f32[1,128], index: 2, kind: input, shape index: {}]   ;;  %s4244_s3 = inlined_call_operand.hbm [shape: bf16[128,256], index: 3, kind: input, shape index: {}]   ;;  %s4245_s4 = inlined_call_operand.vmem [shape: f32[1,256], index: 4, kind: input, shape index: {}]   ;;  %s4246_s5 = inlined_call_operand.hbm [shape: bf16[256,384], index: 5, kind: input, shape index: {}]   ;;  %s4247_s6 = inlined_call_operand.vmem [shape: f32[1,384], index: 6, kind: input, shape index: {}]   ;;  %s4248_s7 = inlined_call_operand.hbm [shape: bf16[384,128], index: 7, kind: input, shape index: {}]   ;;  %s4249_s8 = inlined_call_operand.vmem [shape: f32[1,128], index: 8, kind: input, shape index: {}]   ;;  %s4250_s9 = inlined_call_operand.hbm [shape: f32[8,128], index: 9, kind: output, shape index: {}]  }
   0x1   :  { %15 = vsyncpa [#allocation6], 0 }
   0x2   :  { %16 = vsyncpa [#allocation9], 0 }
   0x3   :  { %17 = vsyncpa [#allocation4], 0  ;;  %s4047_s30 = smov [#allocation5]   ;;  %s3907_s13 = scalar_lea.hbm %s4242_s1, 23616 }
   0x4   :  { %s33_s10 = sshll.u32 %s4047_s30, 4  ;;  %p3908_p0 = scmp.ne.s32.totalorder %s4242_s1, %s3907_s13  ;;  %s34_s10 = int_to_ptr.vmem [resolvable:$true] %s33_s10 }
   0x5   :  { %p3911_p1 = scmp.lt.u32.totalorder %s3907_s13, %s4242_s1 }
   0x7   :  { %p3913_p2 = pnand %p3911_p1, %p3908_p0 }
   0x9   :  { %3916 = shalt.err (!%p3913_p2)
}
   0xa   :  { %s3917_s18 = scalar_lea.vmem %s34_s10, 23616  ;;  %p3922_p4 = scmp.lt.s32.totalorder %s34_s10, %s34_s10 }
   0xb   :  { %p3918_p3 = scmp.ne.s32.totalorder %s34_s10, %s3917_s18  ;;  %p3923_p5 = scmp.lt.s32.totalorder %s3917_s18, %s3917_s18 }
   0xd   :  { %p3924_p6 = por %p3923_p5, %p3922_p4 }
   0xf   :  { %p3925_p7 = pnand %p3924_p6, %p3918_p3 }
  0x11   :  { %3928 = shalt.err (!%p3925_p7)
}
  0x12   :  { %s4048_s19 = smov 64   ;;  %s4049_s20 = smov 4  }
  0x13   :  { %39 = dma.hbm_to_vmem [thread:$0]  %s4242_s1, 23616, %s34_s10, [#allocation6], %s4048_s19, %s4048_s19, %s4049_s20  }
  0x14   :  { %s4050_s23 = smov [#allocation8]   ;;  %s3929_s27 = scalar_lea.hbm %s4246_s5, 6144 }
  0x15   :  { %s61_s24 = sshll.u32 %s4050_s23, 4  ;;  %p3930_p8 = scmp.ne.s32.totalorder %s4246_s5, %s3929_s27  ;;  %s62_s24 = int_to_ptr.vmem [resolvable:$true] %s61_s24 }
  0x16   :  { %p3933_p9 = scmp.lt.u32.totalorder %s3929_s27, %s4246_s5 }
  0x18   :  { %p3935_p10 = pnand %p3933_p9, %p3930_p8 }
  0x1a   :  { %3938 = shalt.err (!%p3935_p10)
}
  0x1b   :  { %s3939_s12 = scalar_lea.vmem %s62_s24, 6144  ;;  %p3944_p12 = scmp.lt.s32.totalorder %s62_s24, %s62_s24 }
  0x1c   :  { %p3940_p11 = scmp.ne.s32.totalorder %s62_s24, %s3939_s12  ;;  %p3945_p13 = scmp.lt.s32.totalorder %s3939_s12, %s3939_s12 }
  0x1e   :  { %p3946_p0 = por %p3945_p13, %p3944_p12 }
  0x20   :  { %p3947_p1 = pnand %p3946_p0, %p3940_p11 }
  0x22   :  { %3950 = shalt.err (!%p3947_p1)
}
  0x23   :  { %s4051_s1 = smov 192   ;;  %s4052_s10 = smov 12  }
  0x24   :  { %67 = dma.hbm_to_vmem [thread:$0]  %s4246_s5, 6144, %s62_s24, [#allocation9], %s4051_s1, %s4051_s1, %s4052_s10  }
  0x25   :  { %s4053_s15 = smov [#allocation2]   ;;  %s4054_s17 = smov [#allocation7]  }
  0x26   :  { %s24_s16 = sshll.u32 %s4053_s15, 4  ;;  %s47_s18 = sshll.u32 %s4054_s17, 4  ;;  %s25_s16 = int_to_ptr.vmem [resolvable:$true] %s24_s16  ;;  %s4139_s18 = int_to_ptr.vmem [resolvable:$true] %s47_s18 }
  0x27   :  { %s3951_s23 = scalar_lea.hbm %s4241_s0, 3072 }
  0x28   :  { %p3952_p2 = scmp.ne.s32.totalorder %s4241_s0, %s3951_s23  ;;  %p3955_p3 = scmp.lt.u32.totalorder %s3951_s23, %s4241_s0 }
  0x2a   :  { %p3957_p4 = pnand %p3955_p3, %p3952_p2 }
  0x2c   :  { %3960 = shalt.err (!%p3957_p4)
}
  0x2d   :  { %s3961_s5 = scalar_lea.vmem %s25_s16, 3072  ;;  %p3966_p6 = scmp.lt.s32.totalorder %s25_s16, %s25_s16 }
  0x2e   :  { %p3962_p5 = scmp.ne.s32.totalorder %s25_s16, %s3961_s5  ;;  %p3967_p7 = scmp.lt.s32.totalorder %s3961_s5, %s3961_s5 }
  0x30   :  { %p3968_p8 = por %p3967_p7, %p3966_p6 }
  0x32   :  { %p3969_p9 = pnand %p3968_p8, %p3962_p5 }
  0x34   :  { %3972 = shalt.err (!%p3969_p9)
}
  0x35   :  { %27 = dma.hbm_to_vmem [thread:$0]  %s4241_s0, 3072, %s25_s16, [#allocation3]  }
  0x36   :  { %s3973_s12 = scalar_lea.hbm %s4244_s3, 2048 }
  0x37   :  { %p3974_p10 = scmp.ne.s32.totalorder %s4244_s3, %s3973_s12  ;;  %p3977_p11 = scmp.lt.u32.totalorder %s3973_s12, %s4244_s3 }
  0x39   :  { %p3979_p12 = pnand %p3977_p11, %p3974_p10 }
  0x3b   :  { %3982 = shalt.err (!%p3979_p12)
}
  0x3c   :  { %s3983_s15 = scalar_lea.vmem %s4139_s18, 2048  ;;  %p3988_p0 = scmp.lt.s32.totalorder %s4139_s18, %s4139_s18 }
  0x3d   :  { %p3984_p13 = scmp.ne.s32.totalorder %s4139_s18, %s3983_s15  ;;  %p3989_p1 = scmp.lt.s32.totalorder %s3983_s15, %s3983_s15 }
  0x3f   :  { %p3990_p2 = por %p3989_p1, %p3988_p0 }
  0x41   :  { %p3991_p3 = pnand %p3990_p2, %p3984_p13 }
  0x43   :  { %3994 = shalt.err (!%p3991_p3)
}
  0x44   :  { %s4055_s0 = smov 128   ;;  %s4056_s16 = smov 8  }
  0x45   :  { %53 = dma.hbm_to_vmem [thread:$0]  %s4244_s3, 2048, %s4139_s18, [#allocation6], %s4055_s0, %s4055_s0, %s4056_s16  }
  0x46   :  { %s4057_s22 = smov [#allocation10]   ;;  %s3995_s27 = scalar_lea.hbm %s4248_s7, 3072 }
  0x47   :  { %s75_s23 = sshll.u32 %s4057_s22, 4  ;;  %p3996_p4 = scmp.ne.s32.totalorder %s4248_s7, %s3995_s27  ;;  %s76_s23 = int_to_ptr.vmem [resolvable:$true] %s75_s23 }
  0x48   :  { %p3999_p5 = scmp.lt.u32.totalorder %s3995_s27, %s4248_s7 }
  0x4a   :  { %p4001_p6 = pnand %p3999_p5, %p3996_p4 }
  0x4c   :  { %4004 = shalt.err (!%p4001_p6)
}
  0x4d   :  { %s4005_s30 = scalar_lea.vmem %s76_s23, 3072  ;;  %p4010_p8 = scmp.lt.s32.totalorder %s76_s23, %s76_s23 }
  0x4e   :  { %p4006_p7 = scmp.ne.s32.totalorder %s76_s23, %s4005_s30  ;;  %p4011_p9 = scmp.lt.s32.totalorder %s4005_s30, %s4005_s30 }
  0x50   :  { %p4012_p10 = por %p4011_p9, %p4010_p8 }
  0x52   :  { %p4013_p11 = pnand %p4012_p10, %p4006_p7 }
  0x54   :  { %4016 = shalt.err (!%p4013_p11)
}
  0x55   :  { %81 = dma.hbm_to_vmem [thread:$0]  %s4248_s7, 3072, %s76_s23, [#allocation9], %s4048_s19, %s4048_s19, %s4049_s20  }
  0x56   :  { %4039 = dma.done.wait [#allocation3], 3072  }
  0x57   :  { %4040 = vsyncadd [#allocation3], 4294964224 }
  0x58   :  { %4041 = dma.done.wait [#allocation6], 25664  }
  0x59   :  { %4042 = vsyncadd [#allocation6], 4294941632 }
  0x5a   :  { %4043 = dma.done.wait [#allocation9], 9216  }
  0x5b   :  { %4044 = vsyncadd [#allocation9], 4294958080  ;;  %v3606_v0 = vld [vmem:[#allocation5 + $0x40] sm:$0xff]   ;;  %v3610_v4 = vld [vmem:[#allocation5 + $0x48] sm:$0xff]   ;;  %vm1631_vm0 = vcmask 48128   ;;  %vm1635_vm1 = vcmask 1042432  }
  0x5c   :  { %v3607_v1 = vld [vmem:[#allocation5 + $0xc0] sm:$0xff]   ;;  %3276 = vmatprep.subr.bf16.mxu0 %v3606_v0  ;;  %v3611_v5 = vld [vmem:[#allocation5 + $0xc8] sm:$0xff]   ;;  %v3614_v8 = vld [vmem:[#allocation5 + $0x50] sm:$0xff]   ;;  %vm4060_vm2 = vmmov 0   ;;  %s4061_s1 = smov [#allocation11]  }
  0x5d   :  { %v3608_v2 = vld [vmem:[#allocation5] sm:$0xff]   ;;  %3298 = vmatprep.subr.bf16.mxu1 %v3607_v1  ;;  %v3612_v6 = vld [vmem:[#allocation5 + $0x8] sm:$0xff]   ;;  %v3615_v9 = vld [vmem:[#allocation5 + $0xd0] sm:$0xff]   ;;  %s2989_s10 = sshll.u32 %s4061_s1, 4  ;;  %s2990_s10 = int_to_ptr.vmem [resolvable:$true] %s2989_s10 }
  0x5e   :  { %v3609_v3 = vld [vmem:[#allocation5 + $0x80] sm:$0xff]   ;;  %3277 = vmatpush3.bf16.msra.mxu0 %v3608_v2  ;;  %v3613_v7 = vld [vmem:[#allocation5 + $0x88] sm:$0xff]   ;;  %v3616_v10 = vld [vmem:[#allocation5 + $0x10] sm:$0xff]   ;;  %p4022_p13 = scmp.lt.s32.totalorder %s2990_s10, %s2990_s10 }
  0x5f   :  { %3299 = vmatpush3.bf16.msra.mxu1 %v3609_v3  ;;  %3278 = vmatprep.subr.bf16.mxu0 %v3610_v4  ;;  %v3617_v11 = vld [vmem:[#allocation5 + $0x90] sm:$0xff]   ;;  %v3618_v12 = vld [vmem:[#allocation5 + $0x58] sm:$0xff]   ;;  %v3622_v16 = vld [vmem:[#allocation5 + $0x60] sm:$0xff]  }
  0x60   :  { %3300 = vmatprep.subr.bf16.mxu1 %v3611_v5  ;;  %v3619_v13 = vld [vmem:[#allocation5 + $0xd8] sm:$0xff]   ;;  %v3623_v17 = vld [vmem:[#allocation5 + $0xe0] sm:$0xff]   ;;  %v3626_v20 = vld [vmem:[#allocation5 + $0x68] sm:$0xff]  }
  0x61   :  { %v3620_v14 = vld [vmem:[#allocation5 + $0x18] sm:$0xff]   ;;  %v3624_v18 = vld [vmem:[#allocation5 + $0x20] sm:$0xff]   ;;  %v3627_v21 = vld [vmem:[#allocation5 + $0xe8] sm:$0xff]  }
  0x62   :  { %3279 = vmatpush3.bf16.msra.mxu0 %v3612_v6  ;;  %v3621_v15 = vld [vmem:[#allocation5 + $0x98] sm:$0xff]   ;;  %v3625_v19 = vld [vmem:[#allocation5 + $0xa0] sm:$0xff]   ;;  %v3628_v22 = vld [vmem:[#allocation5 + $0x28] sm:$0xff]  }
  0x63   :  { %3301 = vmatpush3.bf16.msra.mxu1 %v3613_v7  ;;  %3280 = vmatprep.subr.bf16.mxu0 %v3614_v8  ;;  %v3629_v23 = vld [vmem:[#allocation5 + $0xa8] sm:$0xff]   ;;  %v3630_v24 = vld [vmem:[#allocation5 + $0x70] sm:$0xff]   ;;  %v3634_v28 = vld [vmem:[#allocation5 + $0x78] sm:$0xff]  }
  0x64   :  { %3302 = vmatprep.subr.bf16.mxu1 %v3615_v9  ;;  %v3631_v25 = vld [vmem:[#allocation5 + $0xf0] sm:$0xff]   ;;  %v3635_v29 = vld [vmem:[#allocation5 + $0xf8] sm:$0xff]   ;;  %v101_v32 = vld [vmem:[#allocation2 + $0x8] sm:$0xff] }
  0x65   :  { %v3632_v26 = vld [vmem:[#allocation5 + $0x30] sm:$0xff]   ;;  %v3636_v30 = vld [vmem:[#allocation5 + $0x38] sm:$0xff]   ;;  %v100_v34 = vld [vmem:[#allocation2] sm:$0xff]  ;;  %v125_v35 = vpack.c.bf16 %v101_v32, %v101_v32 }
  0x66   :  { %3281 = vmatpush3.bf16.msra.mxu0 %v3616_v10  ;;  %v3633_v27 = vld [vmem:[#allocation5 + $0xb0] sm:$0xff]   ;;  %v3637_v31 = vld [vmem:[#allocation5 + $0xb8] sm:$0xff]   ;;  %v124_v37 = vpack.c.bf16 %v100_v34, %v100_v34  ;;  %v3638_v40 = vld [vmem:[#allocation5 + $0x140] sm:$0xff]  }
  0x67   :  { %3303 = vmatpush3.bf16.msra.mxu1 %v3617_v11  ;;  %3282 = vmatprep.subr.bf16.mxu0 %v3618_v12  ;;  %v103_v33 = vld [vmem:[#allocation2 + $0x18] sm:$0xff]  ;;  %v102_v38 = vld [vmem:[#allocation2 + $0x10] sm:$0xff]  ;;  %v3639_v41 = vld [vmem:[#allocation5 + $0x1c0] sm:$0xff]  }
  0x68   :  { %3304 = vmatprep.subr.bf16.mxu1 %v3619_v13  ;;  %v127_v36 = vpack.c.bf16 %v103_v33, %v103_v33  ;;  %v126_v39 = vpack.c.bf16 %v102_v38, %v102_v38  ;;  %1671 = vmatprep.mubr.bf16.mxu0 %v125_v35  ;;  %v3640_v42 = vld [vmem:[#allocation5 + $0x100] sm:$0xff]   ;;  %v3642_v44 = vld [vmem:[#allocation5 + $0x148] sm:$0xff]   ;;  %v3646_v48 = vld [vmem:[#allocation5 + $0x150] sm:$0xff]  }
  0x69   :  { %v3641_v43 = vld [vmem:[#allocation5 + $0x180] sm:$0xff]   ;;  %v3643_v45 = vld [vmem:[#allocation5 + $0x1c8] sm:$0xff]   ;;  %v3647_v49 = vld [vmem:[#allocation5 + $0x1d0] sm:$0xff]  }
  0x6a   :  { %3283 = vmatpush3.bf16.msra.mxu0 %v3620_v14  ;;  %1711 = vmatprep.mubr.bf16.mxu1 %v127_v36  ;;  %v3644_v46 = vld [vmem:[#allocation5 + $0x108] sm:$0xff]   ;;  %v3648_v50 = vld [vmem:[#allocation5 + $0x110] sm:$0xff]   ;;  %v3650_v52 = vld [vmem:[#allocation5 + $0x158] sm:$0xff]  }
  0x6b   :  { %3305 = vmatpush3.bf16.msra.mxu1 %v3621_v15  ;;  %3284 = vmatprep.subr.bf16.mxu0 %v3622_v16  ;;  %v3645_v47 = vld [vmem:[#allocation5 + $0x188] sm:$0xff]   ;;  %v3649_v51 = vld [vmem:[#allocation5 + $0x190] sm:$0xff]   ;;  %v3651_v53 = vld [vmem:[#allocation5 + $0x1d8] sm:$0xff]  }
  0x6c   :  { %3306 = vmatprep.subr.bf16.mxu1 %v3623_v17  ;;  %v3652_v54 = vld [vmem:[#allocation5 + $0x118] sm:$0xff]   ;;  %v3654_v56 = vld [vmem:[#allocation5 + $0x160] sm:$0xff]   ;;  %v3658_v60 = vld [vmem:[#allocation5 + $0x168] sm:$0xff]  }
  0x6d   :  { %v3653_v55 = vld [vmem:[#allocation5 + $0x198] sm:$0xff]   ;;  %v3655_v57 = vld [vmem:[#allocation5 + $0x1e0] sm:$0xff]   ;;  %v3659_v61 = vld [vmem:[#allocation5 + $0x1e8] sm:$0xff]  }
  0x6e   :  { %3285 = vmatpush3.bf16.msra.mxu0 %v3624_v18  ;;  %v3656_v58 = vld [vmem:[#allocation5 + $0x120] sm:$0xff]   ;;  %v3660_v62 = vld [vmem:[#allocation5 + $0x128] sm:$0xff]   ;;  %v3662_v0 = vld [vmem:[#allocation5 + $0x170] sm:$0xff]  }
  0x6f   :  { %3307 = vmatpush3.bf16.msra.mxu1 %v3625_v19  ;;  %3286 = vmatprep.subr.bf16.mxu0 %v3626_v20  ;;  %v3657_v59 = vld [vmem:[#allocation5 + $0x1a0] sm:$0xff]   ;;  %v3661_v63 = vld [vmem:[#allocation5 + $0x1a8] sm:$0xff]   ;;  %v3663_v1 = vld [vmem:[#allocation5 + $0x1f0] sm:$0xff]  }
  0x70   :  { %3308 = vmatprep.subr.bf16.mxu1 %v3627_v21  ;;  %v3664_v2 = vld [vmem:[#allocation5 + $0x130] sm:$0xff]   ;;  %v3666_v4 = vld [vmem:[#allocation5 + $0x178] sm:$0xff]   ;;  %v105_v8 = vld [vmem:[#allocation2 + $0x28] sm:$0xff] }
  0x71   :  { %v3665_v3 = vld [vmem:[#allocation5 + $0x1b0] sm:$0xff]   ;;  %v3667_v5 = vld [vmem:[#allocation5 + $0x1f8] sm:$0xff]   ;;  %v129_v10 = vpack.c.bf16 %v105_v8, %v105_v8  ;;  %v104_v12 = vld [vmem:[#allocation2 + $0x20] sm:$0xff] }
  0x72   :  { %3287 = vmatpush3.bf16.msra.mxu0 %v3628_v22  ;;  %v3668_v6 = vld [vmem:[#allocation5 + $0x138] sm:$0xff]   ;;  %v106_v13 = vld [vmem:[#allocation2 + $0x30] sm:$0xff]  ;;  %v128_v14 = vpack.c.bf16 %v104_v12, %v104_v12  ;;  %v3670_v16 = vld [vmem:[#allocation5 + $0x240] sm:$0xff]  }
  0x73   :  { %3309 = vmatpush3.bf16.msra.mxu1 %v3629_v23  ;;  %3288 = vmatprep.subr.bf16.mxu0 %v3630_v24  ;;  %v3669_v7 = vld [vmem:[#allocation5 + $0x1b8] sm:$0xff]   ;;  %v130_v15 = vpack.c.bf16 %v106_v13, %v106_v13  ;;  %v3671_v17 = vld [vmem:[#allocation5 + $0x2c0] sm:$0xff]   ;;  %v3674_v20 = vld [vmem:[#allocation5 + $0x248] sm:$0xff]  }
  0x74   :  { %3310 = vmatprep.subr.bf16.mxu1 %v3631_v25  ;;  %v107_v9 = vld [vmem:[#allocation2 + $0x38] sm:$0xff]  ;;  %v3672_v18 = vld [vmem:[#allocation5 + $0x200] sm:$0xff]   ;;  %v3675_v21 = vld [vmem:[#allocation5 + $0x2c8] sm:$0xff]  }
  0x75   :  { %v131_v11 = vpack.c.bf16 %v107_v9, %v107_v9  ;;  %v3673_v19 = vld [vmem:[#allocation5 + $0x280] sm:$0xff]   ;;  %v3676_v22 = vld [vmem:[#allocation5 + $0x208] sm:$0xff]   ;;  %v3678_v24 = vld [vmem:[#allocation5 + $0x250] sm:$0xff]  }
  0x76   :  { %3289 = vmatpush3.bf16.msra.mxu0 %v3632_v26  ;;  %v3677_v23 = vld [vmem:[#allocation5 + $0x288] sm:$0xff]   ;;  %v3679_v25 = vld [vmem:[#allocation5 + $0x2d0] sm:$0xff]   ;;  %v3686_v32 = vld [vmem:[#allocation5 + $0x260] sm:$0xff]  }
  0x77   :  { %3311 = vmatpush3.bf16.msra.mxu1 %v3633_v27  ;;  %3290 = vmatprep.subr.bf16.mxu0 %v3634_v28  ;;  %v3680_v26 = vld [vmem:[#allocation5 + $0x210] sm:$0xff]   ;;  %v3682_v28 = vld [vmem:[#allocation5 + $0x258] sm:$0xff]   ;;  %v3687_v33 = vld [vmem:[#allocation5 + $0x2e0] sm:$0xff]  }
  0x78   :  { %3312 = vmatprep.subr.bf16.mxu1 %v3635_v29  ;;  %v3681_v27 = vld [vmem:[#allocation5 + $0x290] sm:$0xff]   ;;  %v3683_v29 = vld [vmem:[#allocation5 + $0x2d8] sm:$0xff]   ;;  %v3688_v34 = vld [vmem:[#allocation5 + $0x220] sm:$0xff]  }
  0x79   :  { %v3689_v35 = vld [vmem:[#allocation5 + $0x2a0] sm:$0xff]   ;;  %v3690_v36 = vld [vmem:[#allocation5 + $0x268] sm:$0xff]  }
  0x7a   :  { %3291 = vmatpush3.bf16.msra.mxu0 %v3636_v30  ;;  %v3684_v30 = vld [vmem:[#allocation5 + $0x218] sm:$0xff]   ;;  %v3692_v38 = vld [vmem:[#allocation5 + $0x228] sm:$0xff]   ;;  %v3718_v8 = vld [vmem:[#allocation5 + $0x360] sm:$0xff]  }
  0x7b   :  { %3313 = vmatpush3.bf16.msra.mxu1 %v3637_v31  ;;  %3320 = vmatprep.subr.bf16.mxu0 %v3638_v40  ;;  %v3685_v31 = vld [vmem:[#allocation5 + $0x298] sm:$0xff]   ;;  %v3694_v40 = vld [vmem:[#allocation5 + $0x270] sm:$0xff]   ;;  %v3719_v9 = vld [vmem:[#allocation5 + $0x3e0] sm:$0xff]  }
  0x7c   :  { %3342 = vmatprep.subr.bf16.mxu1 %v3639_v41  ;;  %v3695_v41 = vld [vmem:[#allocation5 + $0x2f0] sm:$0xff]   ;;  %v3722_v12 = vld [vmem:[#allocation5 + $0x368] sm:$0xff]  }
  0x7d   :  { %1672 = vmatmul.mubr.bf16.vlgmr.msra.gmra.mrb[0].mxu0 %v124_v37  ;;  %v3691_v37 = vld [vmem:[#allocation5 + $0x2e8] sm:$0xff]  }
  0x7e   :  { %1712 = vmatmul.mubr.bf16.vlgmr.msra.gmra.mrb[0].mxu1 %v126_v39  ;;  %3321 = vmatpush3.bf16.msra.mxu0 %v3640_v42  ;;  %v3693_v39 = vld [vmem:[#allocation5 + $0x2a8] sm:$0xff]   ;;  %v3696_v42 = vld [vmem:[#allocation5 + $0x230] sm:$0xff]  }
  0x7f   :  { %3343 = vmatpush3.bf16.msra.mxu1 %v3641_v43  ;;  %3322 = vmatprep.subr.bf16.mxu0 %v3642_v44  ;;  %v3697_v43 = vld [vmem:[#allocation5 + $0x2b0] sm:$0xff]   ;;  %v3698_v44 = vld [vmem:[#allocation5 + $0x278] sm:$0xff]   ;;  %v3723_v13 = vld [vmem:[#allocation5 + $0x3e8] sm:$0xff]  }
  0x80   :  { %3344 = vmatprep.subr.bf16.mxu1 %v3643_v45  ;;  %1751 = vmatprep.mubr.bf16.mxu0 %v129_v10  ;;  %v3699_v45 = vld [vmem:[#allocation5 + $0x2f8] sm:$0xff]   ;;  %v3720_v10 = vld [vmem:[#allocation5 + $0x320] sm:$0xff]  }
  0x81   :  { %1791 = vmatprep.mubr.bf16.mxu1 %v131_v11  ;;  %v3721_v11 = vld [vmem:[#allocation5 + $0x3a0] sm:$0xff]  }
  0x82   :  { %3323 = vmatpush3.bf16.msra.mxu0 %v3644_v46  ;;  %v3700_v46 = vld [vmem:[#allocation5 + $0x238] sm:$0xff]  }
  0x83   :  { %3345 = vmatpush3.bf16.msra.mxu1 %v3645_v47  ;;  %3324 = vmatprep.subr.bf16.mxu0 %v3646_v48  ;;  %v3701_v47 = vld [vmem:[#allocation5 + $0x2b8] sm:$0xff]   ;;  %v109_v48 = vld [vmem:[#allocation2 + $0x48] sm:$0xff] }
  0x84   :  { %3346 = vmatprep.subr.bf16.mxu1 %v3647_v49  ;;  %v133_v49 = vpack.c.bf16 %v109_v48, %v109_v48  ;;  %v3750_v48 = vld [vmem:[#allocation5 + $0x460] sm:$0xff]  }
  0x86   :  { %3325 = vmatpush3.bf16.msra.mxu0 %v3648_v50  ;;  %v111_v50 = vld [vmem:[#allocation2 + $0x58] sm:$0xff] }
  0x87   :  { %3347 = vmatpush3.bf16.msra.mxu1 %v3649_v51  ;;  %3326 = vmatprep.subr.bf16.mxu0 %v3650_v52  ;;  %v108_v51 = vld [vmem:[#allocation2 + $0x40] sm:$0xff]  ;;  %v110_v52 = vld [vmem:[#allocation2 + $0x50] sm:$0xff] }
  0x88   :  { %3348 = vmatprep.subr.bf16.mxu1 %v3651_v53  ;;  %v135_v53 = vpack.c.bf16 %v111_v50, %v111_v50  ;;  %v3752_v50 = vld [vmem:[#allocation5 + $0x420] sm:$0xff]  }
  0x8a   :  { %3327 = vmatpush3.bf16.msra.mxu0 %v3652_v54  ;;  %v132_v54 = vpack.c.bf16 %v108_v51, %v108_v51  ;;  %v3753_v51 = vld [vmem:[#allocation5 + $0x4a0] sm:$0xff]  }
  0x8b   :  { %3349 = vmatpush3.bf16.msra.mxu1 %v3653_v55  ;;  %3328 = vmatprep.subr.bf16.mxu0 %v3654_v56  ;;  %v134_v55 = vpack.c.bf16 %v110_v52, %v110_v52  ;;  %v3702_v56 = vld [vmem:[#allocation5 + $0x340] sm:$0xff]   ;;  %v3754_v52 = vld [vmem:[#allocation5 + $0x468] sm:$0xff]  }
  0x8c   :  { %3350 = vmatprep.subr.bf16.mxu1 %v3655_v57  ;;  %v3703_v57 = vld [vmem:[#allocation5 + $0x3c0] sm:$0xff]  }
  0x8e   :  { %3329 = vmatpush3.bf16.msra.mxu0 %v3656_v58  ;;  %v3704_v58 = vld [vmem:[#allocation5 + $0x300] sm:$0xff]  }
  0x8f   :  { %3351 = vmatpush3.bf16.msra.mxu1 %v3657_v59  ;;  %3330 = vmatprep.subr.bf16.mxu0 %v3658_v60  ;;  %v3705_v59 = vld [vmem:[#allocation5 + $0x380] sm:$0xff]   ;;  %v3706_v60 = vld [vmem:[#allocation5 + $0x348] sm:$0xff]  }
  0x90   :  { %3352 = vmatprep.subr.bf16.mxu1 %v3659_v61  ;;  %v3707_v61 = vld [vmem:[#allocation5 + $0x3c8] sm:$0xff]  }
  0x92   :  { %3331 = vmatpush3.bf16.msra.mxu0 %v3660_v62  ;;  %v3708_v62 = vld [vmem:[#allocation5 + $0x308] sm:$0xff]  }
  0x93   :  { %3353 = vmatpush3.bf16.msra.mxu1 %v3661_v63  ;;  %3332 = vmatprep.subr.bf16.mxu0 %v3662_v0  ;;  %v3709_v63 = vld [vmem:[#allocation5 + $0x388] sm:$0xff]   ;;  %v3710_v0 = vld [vmem:[#allocation5 + $0x350] sm:$0xff]  }
  0x94   :  { %3354 = vmatprep.subr.bf16.mxu1 %v3663_v1  ;;  %v3711_v1 = vld [vmem:[#allocation5 + $0x3d0] sm:$0xff]  }
  0x96   :  { %3333 = vmatpush3.bf16.msra.mxu0 %v3664_v2  ;;  %v3712_v2 = vld [vmem:[#allocation5 + $0x310] sm:$0xff]  }
  0x97   :  { %3355 = vmatpush3.bf16.msra.mxu1 %v3665_v3  ;;  %3334 = vmatprep.subr.bf16.mxu0 %v3666_v4  ;;  %v3713_v3 = vld [vmem:[#allocation5 + $0x390] sm:$0xff]   ;;  %v3714_v4 = vld [vmem:[#allocation5 + $0x358] sm:$0xff]  }
  0x98   :  { %3356 = vmatprep.subr.bf16.mxu1 %v3667_v5  ;;  %v3715_v5 = vld [vmem:[#allocation5 + $0x3d8] sm:$0xff]  }
  0x9a   :  { %3335 = vmatpush3.bf16.msra.mxu0 %v3668_v6  ;;  %v3716_v6 = vld [vmem:[#allocation5 + $0x318] sm:$0xff]  }
  0x9b   :  { %3357 = vmatpush3.bf16.msra.mxu1 %v3669_v7  ;;  %3364 = vmatprep.subr.bf16.mxu0 %v3670_v16  ;;  %v3717_v7 = vld [vmem:[#allocation5 + $0x398] sm:$0xff]   ;;  %v3726_v16 = vld [vmem:[#allocation5 + $0x370] sm:$0xff]  }
  0x9c   :  { %3386 = vmatprep.subr.bf16.mxu1 %v3671_v17  ;;  %v3727_v17 = vld [vmem:[#allocation5 + $0x3f0] sm:$0xff]  }
  0x9d   :  { %1752 = vmatmul.mubr.bf16.vlgmr.msra.gmra.mrb[4].mxu0 %v128_v14  ;;  %v3724_v14 = vld [vmem:[#allocation5 + $0x328] sm:$0xff]  }
  0x9e   :  { %1792 = vmatmul.mubr.bf16.vlgmr.msra.gmra.mrb[4].mxu1 %v130_v15  ;;  %3365 = vmatpush3.bf16.msra.mxu0 %v3672_v18  ;;  %v3725_v15 = vld [vmem:[#allocation5 + $0x3a8] sm:$0xff]   ;;  %v3728_v18 = vld [vmem:[#allocation5 + $0x330] sm:$0xff]  }
  0x9f   :  { %3387 = vmatpush3.bf16.msra.mxu1 %v3673_v19  ;;  %3366 = vmatprep.subr.bf16.mxu0 %v3674_v20  ;;  %v3729_v19 = vld [vmem:[#allocation5 + $0x3b0] sm:$0xff]   ;;  %v3730_v20 = vld [vmem:[#allocation5 + $0x378] sm:$0xff]  }
  0xa0   :  { %3388 = vmatprep.subr.bf16.mxu1 %v3675_v21  ;;  %1831 = vmatprep.mubr.bf16.mxu0 %v133_v49  ;;  %v3731_v21 = vld [vmem:[#allocation5 + $0x3f8] sm:$0xff]   ;;  %v3751_v49 = vld [vmem:[#allocation5 + $0x4e0] sm:$0xff]  }
  0xa1   :  { %1871 = vmatprep.mubr.bf16.mxu1 %v135_v53  ;;  %v3755_v53 = vld [vmem:[#allocation5 + $0x4e8] sm:$0xff]  }
  0xa2   :  { %3367 = vmatpush3.bf16.msra.mxu0 %v3676_v22  ;;  %v3732_v22 = vld [vmem:[#allocation5 + $0x338] sm:$0xff]  }
  0xa3   :  { %3389 = vmatpush3.bf16.msra.mxu1 %v3677_v23  ;;  %3368 = vmatprep.subr.bf16.mxu0 %v3678_v24  ;;  %v3733_v23 = vld [vmem:[#allocation5 + $0x3b8] sm:$0xff]   ;;  %v113_v24 = vld [vmem:[#allocation2 + $0x68] sm:$0xff] }
  0xa4   :  { %3390 = vmatprep.subr.bf16.mxu1 %v3679_v25  ;;  %v115_v25 = vld [vmem:[#allocation2 + $0x78] sm:$0xff] }
  0xa6   :  { %3369 = vmatpush3.bf16.msra.mxu0 %v3680_v26  ;;  %v112_v26 = vld [vmem:[#allocation2 + $0x60] sm:$0xff] }
  0xa7   :  { %3391 = vmatpush3.bf16.msra.mxu1 %v3681_v27  ;;  %3370 = vmatprep.subr.bf16.mxu0 %v3682_v28  ;;  %v137_v27 = vpack.c.bf16 %v113_v24, %v113_v24  ;;  %v139_v28 = vpack.c.bf16 %v115_v25, %v115_v25  ;;  %v3781_v24 = vld [vmem:[#allocation5 + $0x568] sm:$0xff]  }
  0xa8   :  { %3392 = vmatprep.subr.bf16.mxu1 %v3683_v29  ;;  %v136_v29 = vpack.c.bf16 %v112_v26, %v112_v26  ;;  %v3782_v25 = vld [vmem:[#allocation5 + $0x528] sm:$0xff]  }
  0xa9   :  { %v3783_v26 = vld [vmem:[#allocation5 + $0x5a8] sm:$0xff]  }
  0xaa   :  { %3371 = vmatpush3.bf16.msra.mxu0 %v3684_v30  ;;  %v114_v30 = vld [vmem:[#allocation2 + $0x70] sm:$0xff] }
  0xab   :  { %3393 = vmatpush3.bf16.msra.mxu1 %v3685_v31  ;;  %3372 = vmatprep.subr.bf16.mxu0 %v3686_v32  ;;  %v138_v31 = vpack.c.bf16 %v114_v30, %v114_v30  ;;  %v3734_v32 = vld [vmem:[#allocation5 + $0x440] sm:$0xff]   ;;  %v3786_v30 = vld [vmem:[#allocation5 + $0x5b0] sm:$0xff]  }
  0xac   :  { %3394 = vmatprep.subr.bf16.mxu1 %v3687_v33  ;;  %v3735_v33 = vld [vmem:[#allocation5 + $0x4c0] sm:$0xff]  }
  0xae   :  { %3373 = vmatpush3.bf16.msra.mxu0 %v3688_v34  ;;  %v3736_v34 = vld [vmem:[#allocation5 + $0x400] sm:$0xff]  }
  0xaf   :  { %3395 = vmatpush3.bf16.msra.mxu1 %v3689_v35  ;;  %3374 = vmatprep.subr.bf16.mxu0 %v3690_v36  ;;  %v3737_v35 = vld [vmem:[#allocation5 + $0x480] sm:$0xff]   ;;  %v3738_v36 = vld [vmem:[#allocation5 + $0x448] sm:$0xff]  }
  0xb0   :  { %3396 = vmatprep.subr.bf16.mxu1 %v3691_v37  ;;  %v3739_v37 = vld [vmem:[#allocation5 + $0x4c8] sm:$0xff]  }
  0xb2   :  { %3375 = vmatpush3.bf16.msra.mxu0 %v3692_v38  ;;  %v3740_v38 = vld [vmem:[#allocation5 + $0x408] sm:$0xff]  }
  0xb3   :  { %3397 = vmatpush3.bf16.msra.mxu1 %v3693_v39  ;;  %3376 = vmatprep.subr.bf16.mxu0 %v3694_v40  ;;  %v3741_v39 = vld [vmem:[#allocation5 + $0x488] sm:$0xff]   ;;  %v3742_v40 = vld [vmem:[#allocation5 + $0x450] sm:$0xff]  }
  0xb4   :  { %3398 = vmatprep.subr.bf16.mxu1 %v3695_v41  ;;  %v3743_v41 = vld [vmem:[#allocation5 + $0x4d0] sm:$0xff]  }
  0xb6   :  { %3377 = vmatpush3.bf16.msra.mxu0 %v3696_v42  ;;  %v3744_v42 = vld [vmem:[#allocation5 + $0x410] sm:$0xff]  }
  0xb7   :  { %3399 = vmatpush3.bf16.msra.mxu1 %v3697_v43  ;;  %3378 = vmatprep.subr.bf16.mxu0 %v3698_v44  ;;  %v3745_v43 = vld [vmem:[#allocation5 + $0x490] sm:$0xff]   ;;  %v3746_v44 = vld [vmem:[#allocation5 + $0x458] sm:$0xff]  }
  0xb8   :  { %3400 = vmatprep.subr.bf16.mxu1 %v3699_v45  ;;  %v3747_v45 = vld [vmem:[#allocation5 + $0x4d8] sm:$0xff]  }
  0xba   :  { %3379 = vmatpush3.bf16.msra.mxu0 %v3700_v46  ;;  %v3748_v46 = vld [vmem:[#allocation5 + $0x418] sm:$0xff]  }
  0xbb   :  { %3401 = vmatpush3.bf16.msra.mxu1 %v3701_v47  ;;  %3408 = vmatprep.subr.bf16.mxu0 %v3702_v56  ;;  %v3749_v47 = vld [vmem:[#allocation5 + $0x498] sm:$0xff]   ;;  %v3758_v56 = vld [vmem:[#allocation5 + $0x470] sm:$0xff]  }
  0xbc   :  { %3430 = vmatprep.subr.bf16.mxu1 %v3703_v57  ;;  %v3759_v57 = vld [vmem:[#allocation5 + $0x4f0] sm:$0xff]  }
  0xbd   :  { %1832 = vmatmul.mubr.bf16.vlgmr.msra.gmra.mrb[8].mxu0 %v132_v54  ;;  %v3756_v54 = vld [vmem:[#allocation5 + $0x428] sm:$0xff]  }
  0xbe   :  { %1872 = vmatmul.mubr.bf16.vlgmr.msra.gmra.mrb[8].mxu1 %v134_v55  ;;  %3409 = vmatpush3.bf16.msra.mxu0 %v3704_v58  ;;  %v3757_v55 = vld [vmem:[#allocation5 + $0x4a8] sm:$0xff]   ;;  %v3760_v58 = vld [vmem:[#allocation5 + $0x430] sm:$0xff]  }
  0xbf   :  { %3431 = vmatpush3.bf16.msra.mxu1 %v3705_v59  ;;  %3410 = vmatprep.subr.bf16.mxu0 %v3706_v60  ;;  %v3761_v59 = vld [vmem:[#allocation5 + $0x4b0] sm:$0xff]   ;;  %v3762_v60 = vld [vmem:[#allocation5 + $0x478] sm:$0xff]  }
  0xc0   :  { %3432 = vmatprep.subr.bf16.mxu1 %v3707_v61  ;;  %1911 = vmatprep.mubr.bf16.mxu0 %v137_v27  ;;  %v3763_v61 = vld [vmem:[#allocation5 + $0x4f8] sm:$0xff]   ;;  %v3784_v27 = vld [vmem:[#allocation5 + $0x570] sm:$0xff]  }
  0xc1   :  { %1951 = vmatprep.mubr.bf16.mxu1 %v139_v28  ;;  %v121_v28 = vld [vmem:[#allocation2 + $0xa8] sm:$0xff] }
  0xc2   :  { %3411 = vmatpush3.bf16.msra.mxu0 %v3708_v62  ;;  %v3764_v62 = vld [vmem:[#allocation5 + $0x438] sm:$0xff]  }
  0xc3   :  { %3433 = vmatpush3.bf16.msra.mxu1 %v3709_v63  ;;  %3412 = vmatprep.subr.bf16.mxu0 %v3710_v0  ;;  %v3765_v63 = vld [vmem:[#allocation5 + $0x4b8] sm:$0xff]   ;;  %v117_v0 = vld [vmem:[#allocation2 + $0x88] sm:$0xff] }
  0xc4   :  { %3434 = vmatprep.subr.bf16.mxu1 %v3711_v1  ;;  %v119_v1 = vld [vmem:[#allocation2 + $0x98] sm:$0xff] }
  0xc6   :  { %3413 = vmatpush3.bf16.msra.mxu0 %v3712_v2  ;;  %v141_v2 = vpack.c.bf16 %v117_v0, %v117_v0  ;;  %v3805_v0 = vld [vmem:[#allocation7 + $0x44] ss:$8 sps:$4 sm:$0xff]  }
  0xc7   :  { %3435 = vmatpush3.bf16.msra.mxu1 %v3713_v3  ;;  %3414 = vmatprep.subr.bf16.mxu0 %v3714_v4  ;;  %v143_v3 = vpack.c.bf16 %v119_v1, %v119_v1  ;;  %v116_v4 = vld [vmem:[#allocation2 + $0x80] sm:$0xff] }
  0xc8   :  { %3436 = vmatprep.subr.bf16.mxu1 %v3715_v5  ;;  %v118_v5 = vld [vmem:[#allocation2 + $0x90] sm:$0xff]  ;;  %v3803_v1 = vld [vmem:[#allocation7 + $0x40] ss:$8 sps:$4 sm:$0xff]  }
  0xca   :  { %3415 = vmatpush3.bf16.msra.mxu0 %v3716_v6  ;;  %v140_v6 = vpack.c.bf16 %v116_v4, %v116_v4 }
  0xcb   :  { %3437 = vmatpush3.bf16.msra.mxu1 %v3717_v7  ;;  %3416 = vmatprep.subr.bf16.mxu0 %v3718_v8  ;;  %v142_v7 = vpack.c.bf16 %v118_v5, %v118_v5  ;;  %v3766_v8 = vld [vmem:[#allocation5 + $0x540] sm:$0xff]  }
  0xcc   :  { %3438 = vmatprep.subr.bf16.mxu1 %v3719_v9  ;;  %v3767_v9 = vld [vmem:[#allocation5 + $0x500] sm:$0xff]  }
  0xce   :  { %3417 = vmatpush3.bf16.msra.mxu0 %v3720_v10  ;;  %v3768_v10 = vld [vmem:[#allocation5 + $0x580] sm:$0xff]  }
  0xcf   :  { %3439 = vmatpush3.bf16.msra.mxu1 %v3721_v11  ;;  %3418 = vmatprep.subr.bf16.mxu0 %v3722_v12  ;;  %v4058_v11 = vmov 0   ;;  %v3769_v12 = vld [vmem:[#allocation5 + $0x548] sm:$0xff]  }
  0xd0   :  { %3440 = vmatprep.subr.bf16.mxu1 %v3723_v13  ;;  %v3770_v13 = vld [vmem:[#allocation5 + $0x508] sm:$0xff]  }
  0xd2   :  { %3419 = vmatpush3.bf16.msra.mxu0 %v3724_v14  ;;  %v3771_v14 = vld [vmem:[#allocation5 + $0x588] sm:$0xff]  }
  0xd3   :  { %3441 = vmatpush3.bf16.msra.mxu1 %v3725_v15  ;;  %3420 = vmatprep.subr.bf16.mxu0 %v3726_v16  ;;  %v3772_v15 = vld [vmem:[#allocation5 + $0x550] sm:$0xff]  }
  0xd4   :  { %3442 = vmatprep.subr.bf16.mxu1 %v3727_v17  ;;  %v3773_v16 = vld [vmem:[#allocation5 + $0x510] sm:$0xff]  }
  0xd5   :  { %v3774_v17 = vld [vmem:[#allocation5 + $0x590] sm:$0xff]  }
  0xd6   :  { %3421 = vmatpush3.bf16.msra.mxu0 %v3728_v18  ;;  %v3775_v18 = vld [vmem:[#allocation5 + $0x558] sm:$0xff]  }
  0xd7   :  { %3443 = vmatpush3.bf16.msra.mxu1 %v3729_v19  ;;  %3422 = vmatprep.subr.bf16.mxu0 %v3730_v20  ;;  %v3776_v19 = vld [vmem:[#allocation5 + $0x518] sm:$0xff]  }
  0xd8   :  { %3444 = vmatprep.subr.bf16.mxu1 %v3731_v21  ;;  %v3777_v20 = vld [vmem:[#allocation5 + $0x598] sm:$0xff]   ;;  %v3778_v21 = vld [vmem:[#allocation5 + $0x560] sm:$0xff]  }
  0xda   :  { %3423 = vmatpush3.bf16.msra.mxu0 %v3732_v22  ;;  %v3779_v22 = vld [vmem:[#allocation5 + $0x520] sm:$0xff]  }
  0xdb   :  { %3445 = vmatpush3.bf16.msra.mxu1 %v3733_v23  ;;  %3452 = vmatprep.subr.bf16.mxu0 %v3734_v32  ;;  %v3780_v23 = vld [vmem:[#allocation5 + $0x5a0] sm:$0xff]   ;;  %v3787_v32 = vld [vmem:[#allocation5 + $0x578] sm:$0xff]  }
  0xdc   :  { %3474 = vmatprep.subr.bf16.mxu1 %v3735_v33  ;;  %v123_v33 = vld [vmem:[#allocation2 + $0xb8] sm:$0xff] }
  0xdd   :  { %1912 = vmatmul.mubr.bf16.vlgmr.msra.gmra.mrb[12].mxu0 %v136_v29  ;;  %v3785_v29 = vld [vmem:[#allocation5 + $0x530] sm:$0xff]  }
  0xde   :  { %1952 = vmatmul.mubr.bf16.vlgmr.msra.gmra.mrb[12].mxu1 %v138_v31  ;;  %3453 = vmatpush3.bf16.msra.mxu0 %v3736_v34  ;;  %v145_v31 = vpack.c.bf16 %v121_v28, %v121_v28  ;;  %v3788_v34 = vld [vmem:[#allocation5 + $0x538] sm:$0xff]  }
  0xdf   :  { %3475 = vmatpush3.bf16.msra.mxu1 %v3737_v35  ;;  %3454 = vmatprep.subr.bf16.mxu0 %v3738_v36  ;;  %v3789_v35 = vld [vmem:[#allocation5 + $0x5b8] sm:$0xff]   ;;  %v120_v36 = vld [vmem:[#allocation2 + $0xa0] sm:$0xff] }
  0xe0   :  { %3476 = vmatprep.subr.bf16.mxu1 %v3739_v37  ;;  %1991 = vmatprep.mubr.bf16.mxu0 %v141_v2  ;;  %v147_v37 = vpack.c.bf16 %v123_v33, %v123_v33  ;;  %v3824_v28 = vld [vmem:[#allocation8 + $0x48] ss:$12 sps:$4 sm:$0xff]  }
  0xe1   :  { %2031 = vmatprep.mubr.bf16.mxu1 %v143_v3 }
  0xe2   :  { %3455 = vmatpush3.bf16.msra.mxu0 %v3740_v38  ;;  %v3790_v38 = vld [vmem:[#allocation5 + $0x5c0] ss:$0 sps:$4 sm:$0x77]  }
  0xe3   :  { %3477 = vmatpush3.bf16.msra.mxu1 %v3741_v39  ;;  %3456 = vmatprep.subr.bf16.mxu0 %v3742_v40  ;;  %v122_v39 = vld [vmem:[#allocation2 + $0xb0] sm:$0xff]  ;;  %v144_v40 = vpack.c.bf16 %v120_v36, %v120_v36 }
  0xe4   :  { %3478 = vmatprep.subr.bf16.mxu1 %v3743_v41  ;;  %v1637_v41 = vsel %vm1635_vm1, %v3790_v38, 0 }
  0xe6   :  { %3457 = vmatpush3.bf16.msra.mxu0 %v3744_v42  ;;  %v146_v42 = vpack.c.bf16 %v122_v39, %v122_v39 }
  0xe7   :  { %3479 = vmatpush3.bf16.msra.mxu1 %v3745_v43  ;;  %3458 = vmatprep.subr.bf16.mxu0 %v3746_v44 }
  0xe8   :  { %3480 = vmatprep.subr.bf16.mxu1 %v3747_v45  ;;  %v3000_v45 = vld [vmem:[%s4243_s2] ss:$0 sm:$0xff] }
  0xea   :  { %3459 = vmatpush3.bf16.msra.mxu0 %v3748_v46 }
  0xeb   :  { %3481 = vmatpush3.bf16.msra.mxu1 %v3749_v47  ;;  %3460 = vmatprep.subr.bf16.mxu0 %v3750_v48 }
  0xec   :  { %3482 = vmatprep.subr.bf16.mxu1 %v3751_v49 }
  0xee   :  { %3461 = vmatpush3.bf16.msra.mxu0 %v3752_v50 }
  0xef   :  { %3483 = vmatpush3.bf16.msra.mxu1 %v3753_v51  ;;  %3462 = vmatprep.subr.bf16.mxu0 %v3754_v52 }
  0xf0   :  { %3484 = vmatprep.subr.bf16.mxu1 %v3755_v53 }
  0xf2   :  { %3463 = vmatpush3.bf16.msra.mxu0 %v3756_v54 }
  0xf3   :  { %3485 = vmatpush3.bf16.msra.mxu1 %v3757_v55  ;;  %3464 = vmatprep.subr.bf16.mxu0 %v3758_v56  ;;  %v3791_v56 = vld [vmem:[#allocation7] ss:$8 sps:$4 sm:$0xff]  }
  0xf4   :  { %3486 = vmatprep.subr.bf16.mxu1 %v3759_v57  ;;  %v3793_v57 = vld [vmem:[#allocation7 + $0x4] ss:$8 sps:$4 sm:$0xff]  }
  0xf6   :  { %3465 = vmatpush3.bf16.msra.mxu0 %v3760_v58  ;;  %v3796_v58 = vld [vmem:[#allocation7 + $0x14] ss:$8 sps:$4 sm:$0xff]  }
  0xf7   :  { %3487 = vmatpush3.bf16.msra.mxu1 %v3761_v59  ;;  %3466 = vmatprep.subr.bf16.mxu0 %v3762_v60  ;;  %v3794_v59 = vld [vmem:[#allocation7 + $0x10] ss:$8 sps:$4 sm:$0xff]   ;;  %v3799_v60 = vld [vmem:[#allocation7 + $0x24] ss:$8 sps:$4 sm:$0xff]  }
  0xf8   :  { %3488 = vmatprep.subr.bf16.mxu1 %v3763_v61  ;;  %v3797_v61 = vld [vmem:[#allocation7 + $0x20] ss:$8 sps:$4 sm:$0xff]  }
  0xfa   :  { %3467 = vmatpush3.bf16.msra.mxu0 %v3764_v62  ;;  %v3802_v62 = vld [vmem:[#allocation7 + $0x34] ss:$8 sps:$4 sm:$0xff]  }
  0xfb   :  { %3489 = vmatpush3.bf16.msra.mxu1 %v3765_v63  ;;  %3496 = vmatprep.subr.bf16.mxu0 %v3766_v8  ;;  %v3800_v63 = vld [vmem:[#allocation7 + $0x30] ss:$8 sps:$4 sm:$0xff]  }
  0xfc   :  { %2079 = vmatprep.subr.bf16.mxu1 %v4058_v11 }
  0xfd   :  { %1992 = vmatmul.mubr.bf16.vlgmr.msra.gmra.mrb[16].mxu0 %v140_v6 }
  0xfe   :  { %2032 = vmatmul.mubr.bf16.vlgmr.msra.gmra.mrb[16].mxu1 %v142_v7  ;;  %3497 = vmatpush3.bf16.msra.mxu0 %v3767_v9 }
  0xff   :  { %2080 = vmatpush1.bf16.msra.mxu1 %v3768_v10  ;;  %3498 = vmatprep.subr.bf16.mxu0 %v3769_v12 }
 0x100   :  { %2081 = vmatprep.subr.bf16.mxu1 %v4058_v11  ;;  %2071 = vmatprep.mubr.bf16.mxu0 %v145_v31 }
 0x101   :  { %3186 = vmatprep.mubr.msk.bf16.mxu1 %vm1631_vm0, %v147_v37 }
 0x102   :  { %3499 = vmatpush3.bf16.msra.mxu0 %v3770_v13 }
 0x103   :  { %2082 = vmatpush1.bf16.msra.mxu1 %v3771_v14  ;;  %3500 = vmatprep.subr.bf16.mxu0 %v3772_v15  ;;  %v3806_v14 = vld [vmem:[#allocation7 + $0x50] ss:$8 sps:$4 sm:$0xff]  }
 0x104   :  { %2083 = vmatprep.subr.bf16.mxu1 %v4058_v11 }
 0x106   :  { %3501 = vmatpush3.bf16.msra.mxu0 %v3773_v16  ;;  %v3811_v16 = vld [vmem:[#allocation7 + $0x64] ss:$8 sps:$4 sm:$0xff]  }
 0x107   :  { %2084 = vmatpush1.bf16.msra.mxu1 %v3774_v17  ;;  %3502 = vmatprep.subr.bf16.mxu0 %v3775_v18  ;;  %v3809_v17 = vld [vmem:[#allocation7 + $0x60] ss:$8 sps:$4 sm:$0xff]   ;;  %v3814_v18 = vld [vmem:[#allocation7 + $0x74] ss:$8 sps:$4 sm:$0xff]  }
 0x108   :  { %2085 = vmatprep.subr.bf16.mxu1 %v4058_v11 }
 0x10a   :  { %3503 = vmatpush3.bf16.msra.mxu0 %v3776_v19  ;;  %v3812_v19 = vld [vmem:[#allocation7 + $0x70] ss:$8 sps:$4 sm:$0xff]  }
 0x10b   :  { %2086 = vmatpush1.bf16.msra.mxu1 %v3777_v20  ;;  %3504 = vmatprep.subr.bf16.mxu0 %v3778_v21  ;;  %v3815_v20 = vld [vmem:[#allocation8] ss:$12 sps:$4 sm:$0xff]   ;;  %v3817_v21 = vld [vmem:[#allocation8 + $0x4] ss:$12 sps:$4 sm:$0xff]  }
 0x10c   :  { %2087 = vmatprep.subr.bf16.mxu1 %v4058_v11 }
 0x10e   :  { %3505 = vmatpush3.bf16.msra.mxu0 %v3779_v22  ;;  %v3820_v22 = vld [vmem:[#allocation8 + $0x1c] ss:$12 sps:$4 sm:$0xff]  }
 0x10f   :  { %2088 = vmatpush1.bf16.msra.mxu1 %v3780_v23  ;;  %3506 = vmatprep.subr.bf16.mxu0 %v3781_v24  ;;  %v3818_v23 = vld [vmem:[#allocation8 + $0x18] ss:$12 sps:$4 sm:$0xff]   ;;  %v3823_v24 = vld [vmem:[#allocation8 + $0x34] ss:$12 sps:$4 sm:$0xff]  }
 0x110   :  { %2089 = vmatprep.subr.bf16.mxu1 %v4058_v11 }
 0x112   :  { %3507 = vmatpush3.bf16.msra.mxu0 %v3782_v25  ;;  %v3842_v25 = vld [vmem:[#allocation8 + $0xc8] ss:$12 sps:$4 sm:$0xff]  }
 0x113   :  { %2090 = vmatpush1.bf16.msra.mxu1 %v3783_v26  ;;  %3508 = vmatprep.subr.bf16.mxu0 %v3784_v27  ;;  %v3821_v26 = vld [vmem:[#allocation8 + $0x30] ss:$12 sps:$4 sm:$0xff]   ;;  %v3826_v27 = vld [vmem:[#allocation8 + $0x4c] ss:$12 sps:$4 sm:$0xff]  }
 0x114   :  { %2091 = vmatprep.subr.bf16.mxu1 %v4058_v11 }
 0x116   :  { %3509 = vmatpush3.bf16.msra.mxu0 %v3785_v29  ;;  %v3829_v29 = vld [vmem:[#allocation8 + $0x64] ss:$12 sps:$4 sm:$0xff]  }
 0x117   :  { %2092 = vmatpush1.bf16.msra.mxu1 %v3786_v30  ;;  %3510 = vmatprep.subr.bf16.mxu0 %v3787_v32  ;;  %v3827_v30 = vld [vmem:[#allocation8 + $0x60] ss:$12 sps:$4 sm:$0xff]   ;;  %v3832_v32 = vld [vmem:[#allocation8 + $0x7c] ss:$12 sps:$4 sm:$0xff]  }
 0x118   :  { %2093 = vmatprep.subr.bf16.mxu1 %v4058_v11 }
 0x11a   :  { %3511 = vmatpush3.bf16.msra.mxu0 %v3788_v34 }
 0x11b   :  { %2094 = vmatpush1.bf16.msra.mxu1 %v3789_v35  ;;  %2229 = vmatprep.subr.bf16.mxu0 %v3793_v57  ;;  %v3861_v57 = vld [vmem:[#allocation8 + $0x124] ss:$12 sps:$4 sm:$0xff]  }
 0x11c   :  { %2095 = vmatprep.subr.bf16.mxu1 %v4058_v11 }
 0x11d   :  { %2072 = vmatmul.mubr.bf16.vlgmr.msra.gmra.mrb[20].mxu0 %v144_v40 }
 0x11e   :  { %2261 = vmatprep.mubr.bf16.mxu0 %v4058_v11  ;;  %2230 = vmatpush1.bf16.msra.mxu0 %v3791_v56  ;;  %v3808_v11 = vld [vmem:[#allocation7 + $0x54] ss:$8 sps:$4 sm:$0xff]  }
 0x11f   :  { %2096 = vmatpush1.bf16.msra.mxu1 %v1637_v41  ;;  %2231 = vmatprep.subr.bf16.mxu0 %v3796_v58  ;;  %v3830_v41 = vld [vmem:[#allocation8 + $0x78] ss:$12 sps:$4 sm:$0xff]   ;;  %v3854_v56 = vld [vmem:[#allocation8 + $0x108] ss:$12 sps:$4 sm:$0xff]   ;;  %v3859_v58 = vld [vmem:[#allocation8 + $0x120] ss:$12 sps:$4 sm:$0xff]  }
 0x120   :  { %2611 = vmatprep.subr.bf16.mxu1 %v3817_v21 }
 0x122   :  { %2112 = vmatmul.mubr.bf16.vlgmr.msra.gmra.mrb[20].mxu1 %v146_v42  ;;  %2232 = vmatpush1.bf16.msra.mxu0 %v3794_v59  ;;  %v3866_v59 = vld [vmem:[#allocation8 + $0x13c] ss:$12 sps:$4 sm:$0xff]  }
 0x123   :  { %2233 = vmatprep.subr.bf16.mxu0 %v3799_v60  ;;  %2612 = vmatpush1.bf16.msra.mxu1 %v3815_v20 }
 0x124   :  { %2613 = vmatprep.subr.bf16.mxu1 %v3820_v22 }
 0x126   :  { %2234 = vmatpush1.bf16.msra.mxu0 %v3797_v61 }
 0x127   :  { %2235 = vmatprep.subr.bf16.mxu0 %v3802_v62  ;;  %2614 = vmatpush1.bf16.msra.mxu1 %v3818_v23 }
 0x128   :  { %2615 = vmatprep.subr.bf16.mxu1 %v3823_v24 }
 0x12a   :  { %2236 = vmatpush1.bf16.msra.mxu0 %v3800_v63 }
 0x12b   :  { %2237 = vmatprep.subr.bf16.mxu0 %v3805_v0  ;;  %2616 = vmatpush1.bf16.msra.mxu1 %v3821_v26  ;;  %v3864_v0 = vld [vmem:[#allocation8 + $0x138] ss:$12 sps:$4 sm:$0xff]  }
 0x12c   :  { %2617 = vmatprep.subr.bf16.mxu1 %v3826_v27 }
 0x12e   :  { %2238 = vmatpush1.bf16.msra.mxu0 %v3803_v1 }
 0x12f   :  { %2239 = vmatprep.subr.bf16.mxu0 %v3808_v11  ;;  %2618 = vmatpush1.bf16.msra.mxu1 %v3824_v28 }
 0x130   :  { %2619 = vmatprep.subr.bf16.mxu1 %v3829_v29 }
 0x132   :  { %2240 = vmatpush1.bf16.msra.mxu0 %v3806_v14 }
 0x133   :  { %2241 = vmatprep.subr.bf16.mxu0 %v3811_v16  ;;  %2620 = vmatpush1.bf16.msra.mxu1 %v3827_v30 }
 0x134   :  { %2621 = vmatprep.subr.bf16.mxu1 %v3832_v32 }
 0x136   :  { %2242 = vmatpush1.bf16.msra.mxu0 %v3809_v17 }
 0x137   :  { %2243 = vmatprep.subr.bf16.mxu0 %v3814_v18  ;;  %2622 = vmatpush1.bf16.msra.mxu1 %v3830_v41  ;;  %v3862_v41 = vld [vmem:[#allocation8 + $0x128] ss:$12 sps:$4 sm:$0xff]  }
 0x13a   :  { %2244 = vmatpush1.bf16.msra.mxu0 %v3812_v19 }
 0x13b   :  { %3518 = vmatprep.subr.bf16.mxu0 %v3842_v25 }
 0x150   :  { %v3292_v43 = vpop.f32.mrb[0].mxu0 }
 0x151   :  { %v3314_v44 = vpop.f32.mrb[0].mxu1  ;;  %v3293_v46 = vpop.f32.mrb[1].mxu0 }
 0x152   :  { %v3315_v47 = vpop.f32.mrb[1].mxu1  ;;  %v3294_v48 = vadd.f32 %v3293_v46, %v3292_v43  ;;  %v3295_v50 = vpop.f32.mrb[2].mxu0  ;;  %v3833_v46 = vld [vmem:[#allocation8 + $0x90] ss:$12 sps:$4 sm:$0xff]  }
 0x153   :  { %v3316_v49 = vadd.f32 %v3315_v47, %v3314_v44  ;;  %v3317_v51 = vpop.f32.mrb[2].mxu1  ;;  %v3296_v52 = vpop.f32.mrb[3].mxu0  ;;  %v3835_v44 = vld [vmem:[#allocation8 + $0x94] ss:$12 sps:$4 sm:$0xff]   ;;  %v3838_v47 = vld [vmem:[#allocation8 + $0xac] ss:$12 sps:$4 sm:$0xff]  }
 0x154   :  { %v3318_v53 = vpop.f32.mrb[3].mxu1  ;;  %v1674_v54 = vadd.f32 %v3294_v48, %v3000_v45  ;;  %2623 = vmatprep.subr.bf16.mxu1 %v3835_v44  ;;  %v3836_v48 = vld [vmem:[#allocation8 + $0xa8] ss:$12 sps:$4 sm:$0xff]   ;;  %v3839_v50 = vld [vmem:[#allocation8 + $0xc0] ss:$12 sps:$4 sm:$0xff]  }
 0x155   :  { %2624 = vmatpush1.bf16.msra.mxu1 %v3833_v46  ;;  %v3846_v51 = vld [vmem:[#allocation8 + $0xdc] ss:$12 sps:$4 sm:$0xff]   ;;  %v3844_v52 = vld [vmem:[#allocation8 + $0xd8] ss:$12 sps:$4 sm:$0xff]   ;;  %v3851_v53 = vld [vmem:[#allocation8 + $0xf4] ss:$12 sps:$4 sm:$0xff]  }
 0x156   :  { %v1714_v55 = vadd.f32 %v3316_v49, %v1674_v54  ;;  %2625 = vmatprep.subr.bf16.mxu1 %v3838_v47  ;;  %v3841_v49 = vld [vmem:[#allocation8 + $0xc4] ss:$12 sps:$4 sm:$0xff]   ;;  %v3868_v44 = vld [vmem:[#allocation8 + $0x80] ss:$12 sps:$4 sm:$0xff]  }
 0x157   :  { %v3849_v54 = vld [vmem:[#allocation8 + $0xf0] ss:$12 sps:$4 sm:$0xff]   ;;  %v3872_v46 = vld [vmem:[#allocation8 + $0x158] ss:$12 sps:$4 sm:$0xff]  }
 0x158   :  { %v3869_v47 = vld [vmem:[#allocation8 + $0x150] ss:$12 sps:$4 sm:$0xff]  }
 0x159   :  { %2626 = vmatpush1.bf16.msra.mxu1 %v3836_v48  ;;  %v3873_v48 = vld [vmem:[#allocation8 + $0x98] ss:$12 sps:$4 sm:$0xff]  }
 0x15a   :  { %2627 = vmatprep.subr.bf16.mxu1 %v3841_v49  ;;  %v3876_v49 = vld [vmem:[#allocation8 + $0x16c] ss:$12 sps:$4 sm:$0xff]  }
 0x15d   :  { %2628 = vmatpush1.bf16.msra.mxu1 %v3839_v50  ;;  %v3877_v50 = vld [vmem:[#allocation8 + $0x170] ss:$12 sps:$4 sm:$0xff]  }
 0x15e   :  { %2629 = vmatprep.subr.bf16.mxu1 %v3846_v51  ;;  %v3874_v51 = vld [vmem:[#allocation8 + $0x168] ss:$12 sps:$4 sm:$0xff]  }
 0x161   :  { %2630 = vmatpush1.bf16.msra.mxu1 %v3844_v52  ;;  %v3878_v52 = vld [vmem:[#allocation8 + $0xb0] ss:$12 sps:$4 sm:$0xff]  }
 0x162   :  { %2631 = vmatprep.subr.bf16.mxu1 %v3851_v53  ;;  %v3879_v53 = vld [vmem:[#allocation10 + $0x40] sm:$0xff]  }
 0x165   :  { %2632 = vmatpush1.bf16.msra.mxu1 %v3849_v54  ;;  %v4059_v54 = vmov 0.0  }
 0x170   :  { %v3336_v2 = vpop.f32.mrb[4].mxu0 }
 0x171   :  { %v3358_v3 = vpop.f32.mrb[4].mxu1  ;;  %v3337_v4 = vpop.f32.mrb[5].mxu0 }
 0x172   :  { %v3338_v5 = vadd.f32 %v3337_v4, %v3336_v2  ;;  %v3359_v6 = vpop.f32.mrb[5].mxu1  ;;  %v3339_v7 = vpop.f32.mrb[6].mxu0 }
 0x173   :  { %v3360_v8 = vadd.f32 %v3359_v6, %v3358_v3  ;;  %v3361_v9 = vpop.f32.mrb[6].mxu1  ;;  %v3340_v10 = vpop.f32.mrb[7].mxu0 }
 0x174   :  { %v1754_v12 = vadd.f32 %v3338_v5, %v1714_v55  ;;  %v3362_v13 = vpop.f32.mrb[7].mxu1  ;;  %v3856_v55 = vld [vmem:[#allocation8 + $0x10c] ss:$12 sps:$4 sm:$0xff]  }
 0x175   :  { %2633 = vmatprep.subr.bf16.mxu1 %v3856_v55  ;;  %v2139_v55 = vlaneseq }
 0x176   :  { %v1794_v15 = vadd.f32 %v3360_v8, %v1754_v12  ;;  %2634 = vmatpush1.bf16.msra.mxu1 %v3854_v56 }
 0x177   :  { %2635 = vmatprep.subr.bf16.mxu1 %v3861_v57  ;;  %v4199_v56 = vshrl.u32 %v2139_v55, 7 }
 0x179   :  { %v2141_v57 = vsub.s32 0, %v4199_v56 }
 0x17a   :  { %2636 = vmatpush1.bf16.msra.mxu1 %v3859_v58  ;;  %v2137_v58 = vld [vmem:[%s4245_s4] sm:$0x3] }
 0x17b   :  { %2637 = vmatprep.subr.bf16.mxu1 %v3866_v59  ;;  %v2145_v59 = vsub.s32 1, %v4199_v56 }
 0x17e   :  { %2638 = vmatpush1.bf16.msra.mxu1 %v3864_v0 }
 0x190   :  { %v3380_v31 = vpop.f32.mrb[8].mxu0 }
 0x191   :  { %v3402_v33 = vpop.f32.mrb[8].mxu1  ;;  %v3381_v34 = vpop.f32.mrb[9].mxu0 }
 0x192   :  { %v3382_v35 = vadd.f32 %v3381_v34, %v3380_v31  ;;  %v3403_v36 = vpop.f32.mrb[9].mxu1  ;;  %v3383_v37 = vpop.f32.mrb[10].mxu0 }
 0x193   :  { %v3404_v38 = vadd.f32 %v3403_v36, %v3402_v33  ;;  %v3405_v39 = vpop.f32.mrb[10].mxu1  ;;  %v3384_v40 = vpop.f32.mrb[11].mxu0  ;;  %v3843_v33 = vld [vmem:[#allocation8 + $0x8] ss:$12 sps:$4 sm:$0xff]   ;;  %v3848_v36 = vld [vmem:[#allocation8 + $0x20] ss:$12 sps:$4 sm:$0xff]  }
 0x194   :  { %v1834_v42 = vadd.f32 %v3382_v35, %v1794_v15  ;;  %v3406_v43 = vpop.f32.mrb[11].mxu1  ;;  %v3847_v35 = vld [vmem:[#allocation8 + $0xe0] ss:$12 sps:$4 sm:$0xff]   ;;  %v3852_v37 = vld [vmem:[#allocation8 + $0xf8] ss:$12 sps:$4 sm:$0xff]  }
 0x195   :  { %v3857_v39 = vld [vmem:[#allocation8 + $0x110] ss:$12 sps:$4 sm:$0xff]   ;;  %v3867_v43 = vld [vmem:[#allocation8 + $0x140] ss:$12 sps:$4 sm:$0xff]  }
 0x196   :  { %v1874_v45 = vadd.f32 %v3404_v38, %v1834_v42  ;;  %v3853_v38 = vld [vmem:[#allocation8 + $0x38] ss:$12 sps:$4 sm:$0xff]   ;;  %v3858_v40 = vld [vmem:[#allocation8 + $0x50] ss:$12 sps:$4 sm:$0xff]   ;;  %v3863_v42 = vld [vmem:[#allocation8 + $0x68] ss:$12 sps:$4 sm:$0xff]  }
 0x1b0   :  { %v3424_v60 = vpop.f32.mrb[12].mxu0 }
 0x1b1   :  { %v3446_v61 = vpop.f32.mrb[12].mxu1  ;;  %v3425_v62 = vpop.f32.mrb[13].mxu0 }
 0x1b2   :  { %v3447_v63 = vpop.f32.mrb[13].mxu1  ;;  %v3426_v1 = vadd.f32 %v3425_v62, %v3424_v60  ;;  %v3427_v3 = vpop.f32.mrb[14].mxu0  ;;  %v2142_v60 = vrot.slane %v2137_v58, %v2141_v57 }
 0x1b3   :  { %v3448_v2 = vadd.f32 %v3447_v63, %v3446_v61  ;;  %v3449_v4 = vpop.f32.mrb[14].mxu1  ;;  %v3428_v5 = vpop.f32.mrb[15].mxu0  ;;  %v2146_v61 = vrot.slane %v2137_v58, %v2145_v59 }
 0x1b4   :  { %v3450_v6 = vpop.f32.mrb[15].mxu1  ;;  %v1914_v7 = vadd.f32 %v3426_v1, %v1874_v45  ;;  %v3871_v45 = vld [vmem:[#allocation8 + $0x154] ss:$12 sps:$4 sm:$0xff]  }
 0x1b5   :  { %2639 = vmatprep.subr.bf16.mxu1 %v3871_v45 }
 0x1b6   :  { %v1954_v8 = vadd.f32 %v3448_v2, %v1914_v7  ;;  %2640 = vmatpush1.bf16.msra.mxu1 %v3869_v47  ;;  %v3880_v7 = vld [vmem:[#allocation10] sm:$0xff]  }
 0x1b7   :  { %2641 = vmatprep.subr.bf16.mxu1 %v3876_v49 }
 0x1ba   :  { %2642 = vmatpush1.bf16.msra.mxu1 %v3874_v51 }
 0x1bb   :  { %3571 = vmatprep.subr.bf16.mxu1 %v4059_v54 }
 0x1d0   :  { %v3468_v9 = vpop.f32.mrb[16].mxu0 }
 0x1d1   :  { %v3490_v10 = vpop.f32.mrb[16].mxu1  ;;  %v3469_v11 = vpop.f32.mrb[17].mxu0 }
 0x1d2   :  { %v3470_v12 = vadd.f32 %v3469_v11, %v3468_v9  ;;  %v3491_v13 = vpop.f32.mrb[17].mxu1  ;;  %v3471_v14 = vpop.f32.mrb[18].mxu0  ;;  %v3883_v11 = vld [vmem:[#allocation10 + $0x8] sm:$0xff]  }
 0x1d3   :  { %v3492_v15 = vadd.f32 %v3491_v13, %v3490_v10  ;;  %v3493_v16 = vpop.f32.mrb[18].mxu1  ;;  %v3472_v17 = vpop.f32.mrb[19].mxu0  ;;  %v3882_v10 = vld [vmem:[#allocation10 + $0x48] sm:$0xff]   ;;  %v3885_v13 = vld [vmem:[#allocation10 + $0x50] sm:$0xff]  }
 0x1d4   :  { %v1994_v18 = vadd.f32 %v3470_v12, %v1954_v8  ;;  %v3494_v19 = vpop.f32.mrb[19].mxu1  ;;  %v3881_v8 = vld [vmem:[#allocation10 + $0x80] sm:$0xff]   ;;  %v3884_v12 = vld [vmem:[#allocation10 + $0x88] sm:$0xff]   ;;  %v3886_v14 = vld [vmem:[#allocation10 + $0x10] sm:$0xff]  }
 0x1d5   :  { %v3888_v16 = vld [vmem:[#allocation10 + $0x58] sm:$0xff]   ;;  %v3891_v19 = vld [vmem:[#allocation10 + $0x60] sm:$0xff]  }
 0x1d6   :  { %v2034_v20 = vadd.f32 %v3492_v15, %v1994_v18  ;;  %v3887_v15 = vld [vmem:[#allocation10 + $0x90] sm:$0xff]   ;;  %v3889_v17 = vld [vmem:[#allocation10 + $0x18] sm:$0xff]  }
 0x1d7   :  { %v3890_v18 = vld [vmem:[#allocation10 + $0x98] sm:$0xff]  }
 0x1f0   :  { %v3512_v21 = vpop.f32.mrb[20].mxu0 }
 0x1f1   :  { %v3513_v22 = vpop.f32.mrb[21].mxu0 }
 0x1f2   :  { %v3514_v23 = vadd.f32 %v3513_v22, %v3512_v21  ;;  %v3515_v24 = vpop.f32.mrb[22].mxu0  ;;  %v3893_v21 = vld [vmem:[#allocation10 + $0xa0] sm:$0xff]   ;;  %v3894_v22 = vld [vmem:[#allocation10 + $0x68] sm:$0xff]  }
 0x1f3   :  { %v3516_v25 = vpop.f32.mrb[23].mxu0  ;;  %v3896_v24 = vld [vmem:[#allocation10 + $0xa8] sm:$0xff]  }
 0x1f4   :  { %v2074_v26 = vadd.f32 %v3514_v23, %v2034_v20  ;;  %v3892_v20 = vld [vmem:[#allocation10 + $0x20] sm:$0xff]   ;;  %v3895_v23 = vld [vmem:[#allocation10 + $0x28] sm:$0xff]   ;;  %v3897_v25 = vld [vmem:[#allocation10 + $0x70] sm:$0xff]  }
 0x1f5   :  { %v2113_v27 = vpop.f32.mrb[20].mxu1 }
 0x1f6   :  { %v2115_v28 = vpop.f32.mrb[21].mxu1  ;;  %v2114_v29 = vadd.f32 %v2113_v27, %v2074_v26  ;;  %v3898_v26 = vld [vmem:[#allocation10 + $0x30] sm:$0xff]  }
 0x1f7   :  { %v2116_v30 = vpop.f32.mrb[22].mxu1  ;;  %v3899_v27 = vld [vmem:[#allocation10 + $0xb0] sm:$0xff]   ;;  %v3900_v28 = vld [vmem:[#allocation10 + $0x78] sm:$0xff]  }
 0x1f8   :  { %v2117_v31 = vpop.f32.mrb[23].mxu1  ;;  %v2119_v32 = vmax.f32 %v2114_v29, 0.0  ;;  %v3901_v29 = vld [vmem:[#allocation10 + $0x38] sm:$0xff]  }
 0x1f9   :  { %v3902_v30 = vld [vmem:[#allocation10 + $0xb8] sm:$0xff]  }
 0x1fa   :  { %v2120_v34 = vpack.c.bf16 %v2119_v32, %v2119_v32  ;;  %v2338_v31 = vld [vmem:[%s4247_s6] sm:$0x7]  ;;  %v2350_v32 = vsub.s32 2, %v4199_v56 }
 0x1fb   :  { %v3251_v56 = vld [vmem:[%s4249_s8] ss:$0 sm:$0xff]  ;;  %s4017_s8 = scalar_lea.vmem %s2990_s10, 128 }
 0x1fc   :  { %2262 = vmatmul.mubr.bf16.vlgmr.msra.gmra.mrb[24].mxu0 %v2120_v34  ;;  %v2347_v34 = vrot.slane %v2338_v31, %v2145_v59  ;;  %p4018_p12 = scmp.ne.s32.totalorder %s2990_s10, %s4017_s8  ;;  %p4023_p0 = scmp.lt.s32.totalorder %s4017_s8, %s4017_s8 }
 0x1fd   :  { %3519 = vmatpush3.bf16.msra.mxu0 %v3843_v33  ;;  %v2343_v33 = vrot.slane %v2338_v31, %v2141_v57 }
 0x1fe   :  { %3520 = vmatprep.subr.bf16.mxu0 %v3847_v35  ;;  %p4024_p1 = por %p4023_p0, %p4022_p13 }
 0x200   :  { %p4025_p2 = pnand %p4024_p1, %p4018_p12 }
 0x201   :  { %3521 = vmatpush3.bf16.msra.mxu0 %v3848_v36 }
 0x202   :  { %3522 = vmatprep.subr.bf16.mxu0 %v3852_v37  ;;  %v2351_v37 = vrot.slane %v2338_v31, %v2350_v32 }
 0x205   :  { %3523 = vmatpush3.bf16.msra.mxu0 %v3853_v38 }
 0x206   :  { %3524 = vmatprep.subr.bf16.mxu0 %v3857_v39 }
 0x209   :  { %3525 = vmatpush3.bf16.msra.mxu0 %v3858_v40 }
 0x20a   :  { %3526 = vmatprep.subr.bf16.mxu0 %v3862_v41 }
 0x20d   :  { %3527 = vmatpush3.bf16.msra.mxu0 %v3863_v42 }
 0x20e   :  { %3528 = vmatprep.subr.bf16.mxu0 %v3867_v43 }
 0x211   :  { %3529 = vmatpush3.bf16.msra.mxu0 %v3868_v44 }
 0x212   :  { %3530 = vmatprep.subr.bf16.mxu0 %v3872_v46 }
 0x215   :  { %3531 = vmatpush3.bf16.msra.mxu0 %v3873_v48 }
 0x216   :  { %3532 = vmatprep.subr.bf16.mxu0 %v3877_v50 }
 0x219   :  { %3533 = vmatpush3.bf16.msra.mxu0 %v3878_v52 }
 0x21a   :  { %3540 = vmatprep.subr.bf16.mxu0 %v3879_v53 }
 0x2cf   :  { %v2263_v62 = vpop.f32.mrb[24].mxu0 }
 0x2d0   :  { %v2264_v63 = vadd.f32 %v2263_v62, %v2142_v60  ;;  %v2265_v0 = vpop.f32.mrb[25].mxu0 }
 0x2d1   :  { %v2266_v1 = vadd.f32 %v2265_v0, %v2146_v61  ;;  %v2267_v2 = vpop.f32.mrb[26].mxu0 }
 0x2d2   :  { %v2270_v3 = vmax.f32 %v2264_v63, 0.0  ;;  %v2268_v4 = vpop.f32.mrb[27].mxu0 }
 0x2d3   :  { %v2271_v5 = vmax.f32 %v2266_v1, 0.0 }
 0x2d4   :  { %v2272_v9 = vpack.c.bf16 %v2270_v3, %v2270_v3 }
 0x2d5   :  { %v2273_v6 = vpack.c.bf16 %v2271_v5, %v2271_v5 }
 0x2d7   :  { %2643 = vmatprep.mubr.bf16.mxu1 %v2273_v6  ;;  %2684 = vmatprep.mubr.bf16.mxu0 %v2273_v6 }
 0x2d8   :  { %2644 = vmatmul.mubr.bf16.vlgmr.msra.gmra.mrb[24].mxu1 %v2272_v9  ;;  %2685 = vmatmul.mubr.bf16.vlgmr.msra.gmra.mrb[28].mxu0 %v2272_v9 }
 0x2d9   :  { %3541 = vmatpush3.bf16.msra.mxu0 %v3880_v7  ;;  %3572 = vmatpush3.bf16.msra.mxu1 %v3881_v8 }
 0x2da   :  { %3542 = vmatprep.subr.bf16.mxu0 %v3882_v10  ;;  %3573 = vmatprep.subr.bf16.mxu1 %v4059_v54 }
 0x2db   :  { %3587 = vmatprep.mubr.msk.bf16.mxu1 %vm4060_vm2, %v4059_v54 }
 0x2dd   :  { %3543 = vmatpush3.bf16.msra.mxu0 %v3883_v11  ;;  %3574 = vmatpush3.bf16.msra.mxu1 %v3884_v12 }
 0x2de   :  { %3544 = vmatprep.subr.bf16.mxu0 %v3885_v13  ;;  %3575 = vmatprep.subr.bf16.mxu1 %v4059_v54 }
 0x2e1   :  { %3545 = vmatpush3.bf16.msra.mxu0 %v3886_v14  ;;  %3576 = vmatpush3.bf16.msra.mxu1 %v3887_v15 }
 0x2e2   :  { %3546 = vmatprep.subr.bf16.mxu0 %v3888_v16  ;;  %3577 = vmatprep.subr.bf16.mxu1 %v4059_v54 }
 0x2e5   :  { %3547 = vmatpush3.bf16.msra.mxu0 %v3889_v17  ;;  %3578 = vmatpush3.bf16.msra.mxu1 %v3890_v18 }
 0x2e6   :  { %3548 = vmatprep.subr.bf16.mxu0 %v3891_v19  ;;  %3579 = vmatprep.subr.bf16.mxu1 %v4059_v54 }
 0x2e9   :  { %3549 = vmatpush3.bf16.msra.mxu0 %v3892_v20  ;;  %3580 = vmatpush3.bf16.msra.mxu1 %v3893_v21 }
 0x2ea   :  { %3550 = vmatprep.subr.bf16.mxu0 %v3894_v22  ;;  %3581 = vmatprep.subr.bf16.mxu1 %v4059_v54 }
 0x2ed   :  { %3551 = vmatpush3.bf16.msra.mxu0 %v3895_v23  ;;  %3582 = vmatpush3.bf16.msra.mxu1 %v3896_v24 }
 0x2ee   :  { %3583 = vmatprep.subr.bf16.mxu1 %v4059_v54  ;;  %3552 = vmatprep.subr.bf16.mxu0 %v3897_v25 }
 0x2f1   :  { %3553 = vmatpush3.bf16.msra.mxu0 %v3898_v26  ;;  %3584 = vmatpush3.bf16.msra.mxu1 %v3899_v27 }
 0x2f2   :  { %3585 = vmatprep.subr.bf16.mxu1 %v4059_v54  ;;  %3554 = vmatprep.subr.bf16.mxu0 %v3900_v28 }
 0x2f5   :  { %3555 = vmatpush3.bf16.msra.mxu0 %v3901_v29  ;;  %3586 = vmatpush3.bf16.msra.mxu1 %v3902_v30 }
 0x3ab   :  { %v2645_v35 = vpop.f32.mrb[24].mxu1  ;;  %v3534_v36 = vpop.f32.mrb[28].mxu0 }
 0x3ac   :  { %v2646_v38 = vadd.f32 %v2645_v35, %v2343_v33  ;;  %v2647_v39 = vpop.f32.mrb[25].mxu1  ;;  %v3535_v40 = vpop.f32.mrb[29].mxu0 }
 0x3ad   :  { %v2648_v41 = vadd.f32 %v2647_v39, %v2347_v34  ;;  %v3536_v42 = vadd.f32 %v3535_v40, %v3534_v36  ;;  %v2649_v43 = vpop.f32.mrb[26].mxu1  ;;  %v3537_v44 = vpop.f32.mrb[30].mxu0 }
 0x3ae   :  { %v2692_v45 = vmax.f32 %v2646_v38, 0.0  ;;  %v2650_v46 = vpop.f32.mrb[27].mxu1  ;;  %v3538_v47 = vpop.f32.mrb[31].mxu0 }
 0x3af   :  { %v2693_v48 = vmax.f32 %v2648_v41, 0.0  ;;  %v2687_v49 = vadd.f32 %v3536_v42, %v2351_v37 }
 0x3b0   :  { %v2695_v52 = vpack.c.bf16 %v2692_v45, %v2692_v45 }
 0x3b1   :  { %v2696_v50 = vpack.c.bf16 %v2693_v48, %v2693_v48  ;;  %v2694_v51 = vmax.f32 %v2687_v49, 0.0 }
 0x3b3   :  { %v2697_v53 = vpack.c.bf16 %v2694_v51, %v2694_v51  ;;  %2929 = vmatprep.mubr.bf16.mxu0 %v2696_v50 }
 0x3b4   :  { %2930 = vmatmul.mubr.bf16.vlgmr.msra.gmra.mrb[32].mxu0 %v2695_v52 }
 0x3b5   :  { %3588 = vmatmul.mubr.bf16.vlgmr.msra.gmra.mrb[28].mxu1 %v2697_v53 }
 0x487   :  { %v3556_v54 = vpop.f32.mrb[32].mxu0 }
 0x488   :  { %v3557_v55 = vpop.f32.mrb[33].mxu0  ;;  %v2971_v57 = vpop.f32.mrb[28].mxu1 }
 0x489   :  { %v3558_v58 = vadd.f32 %v3557_v55, %v3556_v54  ;;  %v3559_v59 = vpop.f32.mrb[34].mxu0  ;;  %v3589_v60 = vpop.f32.mrb[29].mxu1 }
 0x48a   :  { %v3560_v61 = vpop.f32.mrb[35].mxu0  ;;  %v2974_v62 = vpop.f32.mrb[30].mxu1 }
 0x48b   :  { %v2932_v63 = vadd.f32 %v3558_v58, %v3251_v56  ;;  %v3590_v0 = vpop.f32.mrb[31].mxu1 }
 0x48d   :  { %v2972_v1 = vadd.f32 %v2971_v57, %v2932_v63 }
 0x48f   :  { %v2977_v2 = vsub.f32 0.0, %v2972_v1 }
 0x491   :  { %v2978_v3 = vmul.f32 1.442695, %v2977_v2 }
 0x493   :  { %3903 = vpow2.f32 %v2978_v3 }
 0x49d   :  { %v3904_v4 = vpop.eup %3903 }
 0x49e   :  { %v2980_v5 = vadd.f32 1.0, %v3904_v4 }
 0x4a0   :  { %3905 = vrcp.f32 %v2980_v5 }
 0x4aa   :  { %v3906_v6 = vpop.eup %3905 }
 0x4ab   :  { %2982 = vst [vmem:[#allocation11] sm:$0xff] %v3906_v6 }
 0x4ac   :  { %4028 = shalt.err (!%p4025_p2)
}
 0x4ad   :  { %s4029_s15 = scalar_lea.hbm %s4250_s9, 128 }
 0x4ae   :  { %p4030_p3 = scmp.ne.s32.totalorder %s4250_s9, %s4029_s15  ;;  %p4033_p4 = scmp.lt.u32.totalorder %s4029_s15, %s4250_s9 }
 0x4b0   :  { %p4035_p5 = pnand %p4033_p4, %p4030_p3 }
 0x4b2   :  { %4038 = shalt.err (!%p4035_p5)
}
 0x4b3   :  { %2992 = dma.vmem_to_hbm [thread:$0]  %s2990_s10, 128, %s4250_s9, [#allocation4]  }
 0x4b4   :  { %4045 = dma.done.wait [#allocation4], 128  }
 0x4b5   :  { %4046 = vsyncadd [#allocation4], 4294967168 }
 0x4b6   :  { %2996 = vsyncpa [#allocation3], 1 }
 0x4b7   :  { %2997 = vsyncpa [#allocation6], 1 }
 0x4b8   :  { %2998 = vsyncpa [#allocation9], 1 }
 0x4b9   :  { %2999 = vsyncpa [#allocation4], 1 }

</bundles_post_ra>
